<compile_context>
chip_gen: v6e
topology: v6e:2x2x1
jax: 0.10.0
libtpu: 0.0.40
codegen_flags: <defaults>
</compile_context>

<pallas_src>
import functools

import jax
import jax.numpy as jnp
from jax.experimental import pallas as pl
from jax.experimental.pallas import tpu as pltpu


# ------------------------------ fused kernel ---------------------------------
def _deeplog_fused_kernel(*refs, T, B, H, num_layers):
    # refs layout: x, (w_ih_t, w_hh_t, b) * num_layers, fc_w_t, fc_b, out
    x_ref = refs[0]
    fc_w_ref = refs[1 + 3 * num_layers]
    fc_b_ref = refs[2 + 3 * num_layers]
    out_ref = refs[3 + 3 * num_layers]

    D_in = x_ref.shape[2]
    # Whole (time-major) input tile flattened to (T*B, D); merging leading
    # dims keeps the lane axis untouched.
    seq = x_ref[...].reshape(T * B, D_in)

    # Layer-0 input projection hoisted over all timesteps: one MXU pass.
    w_ih0_ref, _, b0_ref = refs[1], refs[2], refs[3]
    gx0 = (jnp.dot(seq, w_ih0_ref[...], preferred_element_type=jnp.float32)
           + b0_ref[...])                                       # (T*B, 4H)

    # Resident weights (small; stay in vregs / VMEM).
    w_hh = [refs[2 + 3 * l][...] for l in range(num_layers)]    # (H, 4H) each
    w_ih = [refs[1 + 3 * l][...] for l in range(1, num_layers)] # layers >= 1
    bias = [refs[3 + 3 * l][...] for l in range(1, num_layers)]

    h = [jnp.zeros((B, H), jnp.float32) for _ in range(num_layers)]
    c = [jnp.zeros((B, H), jnp.float32) for _ in range(num_layers)]

    def lstm_cell(gates, c_prev):
        # Two full-vreg EUP ops instead of four partial-lane ones; slice after.
        sig = jax.nn.sigmoid(gates)                 # (B, 4H)
        tnh = jnp.tanh(gates)                       # (B, 4H)
        i = sig[:, 0 * H:1 * H]
        f = sig[:, 1 * H:2 * H]
        g = tnh[:, 2 * H:3 * H]
        o = sig[:, 3 * H:4 * H]
        c_new = f * c_prev + i * g
        h_new = o * jnp.tanh(c_new)
        return h_new, c_new

    # Wavefront over time: layer-l step t only depends on layer-(l-1) step t
    # and layer-l step t-1, so the fully-unrolled code exposes cross-layer
    # overlap to the scheduler.  No per-timestep state list is kept.
    for t in range(T):
        gates0 = gx0[t * B:(t + 1) * B, :] + jnp.dot(
            h[0], w_hh[0], preferred_element_type=jnp.float32)  # (B, 4H)
        h[0], c[0] = lstm_cell(gates0, c[0])
        x_l = h[0]
        for l in range(1, num_layers):
            gates = (jnp.dot(x_l, w_ih[l - 1],
                             preferred_element_type=jnp.float32)
                     + jnp.dot(h[l], w_hh[l],
                               preferred_element_type=jnp.float32)
                     + bias[l - 1])
            h[l], c[l] = lstm_cell(gates, c[l])
            x_l = h[l]

    # FC head only on the final hidden state (out[:, -1, :] in PyTorch).
    # Output lanes are padded to 128 -> single unmasked lane-dense store.
    out_ref[...] = (jnp.dot(h[-1], fc_w_ref[...],
                            preferred_element_type=jnp.float32)
                    + fc_b_ref[...]).astype(out_ref.dtype)


# ----------------------------- DeepLog forward -------------------------------
def deeplog_forward(x, params, *, batch_tile=8):
    """x: (B, T, input_size) batch_first (PyTorch convention)."""
    B, T, D = x.shape
    H = params["lstm"][0]["w_hh_t"].shape[0]
    K = params["fc_w_t"].shape[1]
    num_layers = len(params["lstm"])

    SUB, LANE = 8, 128
    B_tile = max(SUB, ((batch_tile + SUB - 1) // SUB) * SUB)  # per-program rows
    B_pad = ((max(B, 1) + B_tile - 1) // B_tile) * B_tile     # padded batch
    K_pad = max(LANE, ((K + LANE - 1) // LANE) * LANE)        # lane-dense out

    # Time-major, batch padded with zero rows (sliced off after the call).
    x_tm = jnp.transpose(x, (1, 0, 2)).astype(jnp.float32)    # (T, B, D)
    if B_pad != B:
        x_tm = jnp.pad(x_tm, ((0, 0), (0, B_pad - B), (0, 0)))

    fc_w_t = params["fc_w_t"]
    fc_b = params["fc_b"]
    if K_pad != K:
        fc_w_t = jnp.pad(fc_w_t, ((0, 0), (0, K_pad - K)))
        fc_b = jnp.pad(fc_b, ((0, 0), (0, K_pad - K)))

    inputs = [x_tm]
    in_specs = [pl.BlockSpec((T, B_tile, D), lambda b: (0, b, 0))]
    for lp in params["lstm"]:
        for arr in (lp["w_ih_t"], lp["w_hh_t"], lp["b"]):
            inputs.append(arr)
            in_specs.append(pl.BlockSpec(arr.shape, lambda b: (0, 0)))
    for arr in (fc_w_t, fc_b):
        inputs.append(arr)
        in_specs.append(pl.BlockSpec(arr.shape, lambda b: (0, 0)))

    kernel = functools.partial(_deeplog_fused_kernel,
                               T=T, B=B_tile, H=H, num_layers=num_layers)

    out = pl.pallas_call(
        kernel,
        out_shape=jax.ShapeDtypeStruct((B_pad, K_pad), jnp.float32),
        grid=(B_pad // B_tile,),                # "parallel" batch axis (v7x)
        in_specs=in_specs,
        out_specs=pl.BlockSpec((B_tile, K_pad), lambda b: (b, 0)),
        compiler_params=pltpu.CompilerParams(
            dimension_semantics=("parallel",)),
    )(*inputs)

    return out[:B, :K]


# ------------------------- deterministic param init --------------------------
def init_params(key, input_size, hidden_size, num_layers, num_keys):
    H = hidden_size
    bound = 1.0 / jnp.sqrt(jnp.float32(H))   # PyTorch LSTM/Linear default init
    params = {"lstm": []}
    for layer in range(num_layers):
        d_in = input_size if layer == 0 else H
        key, k1, k2, k3, k4 = jax.random.split(key, 5)
        w_ih = jax.random.uniform(k1, (4 * H, d_in), jnp.float32, -bound, bound)
        w_hh = jax.random.uniform(k2, (4 * H, H), jnp.float32, -bound, bound)
        b_ih = jax.random.uniform(k3, (4 * H,), jnp.float32, -bound, bound)
        b_hh = jax.random.uniform(k4, (4 * H,), jnp.float32, -bound, bound)
        params["lstm"].append({
            "w_ih_t": w_ih.T,                         # (d_in, 4H)
            "w_hh_t": w_hh.T,                         # (H, 4H)
            "b": (b_ih + b_hh)[None, :],              # (1, 4H)
        })
    key, k1, k2 = jax.random.split(key, 3)
    fc_w = jax.random.uniform(k1, (num_keys, H), jnp.float32, -bound, bound)
    fc_b = jax.random.uniform(k2, (num_keys,), jnp.float32, -bound, bound)
    params["fc_w_t"] = fc_w.T                         # (H, K)
    params["fc_b"] = fc_b[None, :]                    # (1, K)
    return params


# ------------------------------ pure-JAX reference ---------------------------
def deeplog_ref(x, params):
    B = x.shape[0]
    h_seq = x
    for lp in params["lstm"]:
        H = lp["w_hh_t"].shape[0]

        def step(carry, x_t, lp=lp):
            h, c = carry
            gates = x_t @ lp["w_ih_t"] + h @ lp["w_hh_t"] + lp["b"][0]
            i, f, g, o = jnp.split(gates, 4, axis=-1)
            c = jax.nn.sigmoid(f) * c + jax.nn.sigmoid(i) * jnp.tanh(g)
            h = jax.nn.sigmoid(o) * jnp.tanh(c)
            return (h, c), h

        h0 = jnp.zeros((B, H), jnp.float32)
        c0 = jnp.zeros((B, H), jnp.float32)
        _, hs = jax.lax.scan(step, (h0, c0), jnp.transpose(h_seq, (1, 0, 2)))
        h_seq = jnp.transpose(hs, (1, 0, 2))
    return h_seq[:, -1, :] @ params["fc_w_t"] + params["fc_b"][0]


# ------------------------------------ main ------------------------------------
if __name__ == "__main__":
    B, T = 4, 8
    input_size, hidden_size, num_layers, num_keys = 8, 32, 2, 16

    key = jax.random.PRNGKey(0)
    key, xk = jax.random.split(key)
    x = jax.random.normal(xk, (B, T, input_size), jnp.float32)

    params = init_params(key, input_size, hidden_size, num_layers, num_keys)

    out = jax.block_until_ready(deeplog_forward(x, params))

    ref = deeplog_ref(x, params)
    assert out.shape == (B, num_keys)
    assert jnp.allclose(out, ref, atol=1e-4, rtol=1e-4), (
        f"max err {jnp.max(jnp.abs(out - ref))}")

    print("KERNEL_OK")
</pallas_src>

<mosaic_0001>
module attributes {stable_mosaic.version = 11 : i64} {
  func.func @_deeplog_fused_kernel(%arg0: i32, %arg1: memref<8x8x8xf32, #tpu.memory_space<vmem>>, %arg2: memref<8x128xf32, #tpu.memory_space<vmem>>, %arg3: memref<32x128xf32, #tpu.memory_space<vmem>>, %arg4: memref<1x128xf32, #tpu.memory_space<vmem>>, %arg5: memref<32x128xf32, #tpu.memory_space<vmem>>, %arg6: memref<32x128xf32, #tpu.memory_space<vmem>>, %arg7: memref<1x128xf32, #tpu.memory_space<vmem>>, %arg8: memref<32x128xf32, #tpu.memory_space<vmem>>, %arg9: memref<1x128xf32, #tpu.memory_space<vmem>>, %arg10: memref<8x128xf32, #tpu.memory_space<vmem>>) attributes {dimension_semantics = [#tpu.dimension_semantics<parallel>], iteration_bounds = array<i64: 1>, scalar_prefetch = 0 : i64, scratch_operands = 0 : i64, tpu.core_type = #tpu.core_type<tc>, window_params = [{transform_indices = @transform_0, window_bounds = array<i64: 8, 8, 8>}, {pipeline_mode = #tpu.pipeline_mode<synchronous>, transform_indices = @transform_1, window_bounds = array<i64: 8, 128>}, {pipeline_mode = #tpu.pipeline_mode<synchronous>, transform_indices = @transform_2, window_bounds = array<i64: 32, 128>}, {pipeline_mode = #tpu.pipeline_mode<synchronous>, transform_indices = @transform_3, window_bounds = array<i64: 1, 128>}, {pipeline_mode = #tpu.pipeline_mode<synchronous>, transform_indices = @transform_4, window_bounds = array<i64: 32, 128>}, {pipeline_mode = #tpu.pipeline_mode<synchronous>, transform_indices = @transform_5, window_bounds = array<i64: 32, 128>}, {pipeline_mode = #tpu.pipeline_mode<synchronous>, transform_indices = @transform_6, window_bounds = array<i64: 1, 128>}, {pipeline_mode = #tpu.pipeline_mode<synchronous>, transform_indices = @transform_7, window_bounds = array<i64: 32, 128>}, {pipeline_mode = #tpu.pipeline_mode<synchronous>, transform_indices = @transform_8, window_bounds = array<i64: 1, 128>}, {transform_indices = @transform_9, window_bounds = array<i64: 8, 128>}]} {
    %c0 = arith.constant 0 : index
    %c0_0 = arith.constant 0 : index
    %c0_1 = arith.constant 0 : index
    %0 = vector.load %arg1[%c0, %c0_0, %c0_1] : memref<8x8x8xf32, #tpu.memory_space<vmem>>, vector<8x8x8xf32>
    %1 = vector.shape_cast %0 : vector<8x8x8xf32> to vector<64x8xf32>
    %c0_2 = arith.constant 0 : index
    %c0_3 = arith.constant 0 : index
    %2 = vector.load %arg2[%c0_2, %c0_3] : memref<8x128xf32, #tpu.memory_space<vmem>>, vector<8x128xf32>
    %cst = arith.constant dense<0.000000e+00> : vector<64x128xf32>
    %3 = tpu.matmul %1, %2, %cst {dimension_numbers = #tpu.dot_dimension_numbers<[1], [0], [0], [1], [0, 0, 1, 1], [], []>} : vector<64x8xf32>, vector<8x128xf32>, vector<64x128xf32> -> vector<64x128xf32>
    %c0_4 = arith.constant 0 : index
    %c0_5 = arith.constant 0 : index
    %4 = vector.load %arg4[%c0_4, %c0_5] : memref<1x128xf32, #tpu.memory_space<vmem>>, vector<1x128xf32>
    %5 = vector.broadcast %4 : vector<1x128xf32> to vector<64x128xf32>
    %6 = arith.addf %3, %5 : vector<64x128xf32>
    %c0_6 = arith.constant 0 : index
    %c0_7 = arith.constant 0 : index
    %7 = vector.load %arg3[%c0_6, %c0_7] : memref<32x128xf32, #tpu.memory_space<vmem>>, vector<32x128xf32>
    %c0_8 = arith.constant 0 : index
    %c0_9 = arith.constant 0 : index
    %8 = vector.load %arg6[%c0_8, %c0_9] : memref<32x128xf32, #tpu.memory_space<vmem>>, vector<32x128xf32>
    %c0_10 = arith.constant 0 : index
    %c0_11 = arith.constant 0 : index
    %9 = vector.load %arg5[%c0_10, %c0_11] : memref<32x128xf32, #tpu.memory_space<vmem>>, vector<32x128xf32>
    %c0_12 = arith.constant 0 : index
    %c0_13 = arith.constant 0 : index
    %10 = vector.load %arg7[%c0_12, %c0_13] : memref<1x128xf32, #tpu.memory_space<vmem>>, vector<1x128xf32>
    %cst_14 = arith.constant 0.000000e+00 : f32
    %11 = vector.broadcast %cst_14 : f32 to vector<8x32xf32>
    %cst_15 = arith.constant 0.000000e+00 : f32
    %12 = vector.broadcast %cst_15 : f32 to vector<8x32xf32>
    %cst_16 = arith.constant 0.000000e+00 : f32
    %13 = vector.broadcast %cst_16 : f32 to vector<8x32xf32>
    %cst_17 = arith.constant 0.000000e+00 : f32
    %14 = vector.broadcast %cst_17 : f32 to vector<8x32xf32>
    %15 = vector.extract_strided_slice %6 {offsets = [0, 0], sizes = [8, 128], strides = [1, 1]} : vector<64x128xf32> to vector<8x128xf32>
    %cst_18 = arith.constant dense<0.000000e+00> : vector<8x128xf32>
    %16 = tpu.matmul %11, %7, %cst_18 {dimension_numbers = #tpu.dot_dimension_numbers<[1], [0], [0], [1], [0, 0, 1, 1], [], []>} : vector<8x32xf32>, vector<32x128xf32>, vector<8x128xf32> -> vector<8x128xf32>
    %17 = arith.addf %15, %16 : vector<8x128xf32>
    %18 = arith.negf %17 : vector<8x128xf32>
    %19 = math.exp %18 : vector<8x128xf32>
    %cst_19 = arith.constant 1.000000e+00 : f32
    %20 = vector.broadcast %cst_19 : f32 to vector<8x128xf32>
    %21 = arith.addf %20, %19 : vector<8x128xf32>
    %22 = arith.divf %20, %21 : vector<8x128xf32>
    %23 = math.tanh %17 : vector<8x128xf32>
    %24 = vector.extract_strided_slice %22 {offsets = [0, 0], sizes = [8, 32], strides = [1, 1]} : vector<8x128xf32> to vector<8x32xf32>
    %25 = vector.extract_strided_slice %22 {offsets = [0, 32], sizes = [8, 32], strides = [1, 1]} : vector<8x128xf32> to vector<8x32xf32>
    %26 = vector.extract_strided_slice %23 {offsets = [0, 64], sizes = [8, 32], strides = [1, 1]} : vector<8x128xf32> to vector<8x32xf32>
    %27 = vector.extract_strided_slice %22 {offsets = [0, 96], sizes = [8, 32], strides = [1, 1]} : vector<8x128xf32> to vector<8x32xf32>
    %28 = arith.mulf %25, %13 : vector<8x32xf32>
    %29 = arith.mulf %24, %26 : vector<8x32xf32>
    %30 = arith.addf %28, %29 : vector<8x32xf32>
    %31 = math.tanh %30 : vector<8x32xf32>
    %32 = arith.mulf %27, %31 : vector<8x32xf32>
    %cst_20 = arith.constant dense<0.000000e+00> : vector<8x128xf32>
    %33 = tpu.matmul %32, %9, %cst_20 {dimension_numbers = #tpu.dot_dimension_numbers<[1], [0], [0], [1], [0, 0, 1, 1], [], []>} : vector<8x32xf32>, vector<32x128xf32>, vector<8x128xf32> -> vector<8x128xf32>
    %cst_21 = arith.constant dense<0.000000e+00> : vector<8x128xf32>
    %34 = tpu.matmul %12, %8, %cst_21 {dimension_numbers = #tpu.dot_dimension_numbers<[1], [0], [0], [1], [0, 0, 1, 1], [], []>} : vector<8x32xf32>, vector<32x128xf32>, vector<8x128xf32> -> vector<8x128xf32>
    %35 = arith.addf %33, %34 : vector<8x128xf32>
    %36 = vector.broadcast %10 : vector<1x128xf32> to vector<8x128xf32>
    %37 = arith.addf %35, %36 : vector<8x128xf32>
    %38 = arith.negf %37 : vector<8x128xf32>
    %39 = math.exp %38 : vector<8x128xf32>
    %cst_22 = arith.constant 1.000000e+00 : f32
    %40 = vector.broadcast %cst_22 : f32 to vector<8x128xf32>
    %41 = arith.addf %40, %39 : vector<8x128xf32>
    %42 = arith.divf %40, %41 : vector<8x128xf32>
    %43 = math.tanh %37 : vector<8x128xf32>
    %44 = vector.extract_strided_slice %42 {offsets = [0, 0], sizes = [8, 32], strides = [1, 1]} : vector<8x128xf32> to vector<8x32xf32>
    %45 = vector.extract_strided_slice %42 {offsets = [0, 32], sizes = [8, 32], strides = [1, 1]} : vector<8x128xf32> to vector<8x32xf32>
    %46 = vector.extract_strided_slice %43 {offsets = [0, 64], sizes = [8, 32], strides = [1, 1]} : vector<8x128xf32> to vector<8x32xf32>
    %47 = vector.extract_strided_slice %42 {offsets = [0, 96], sizes = [8, 32], strides = [1, 1]} : vector<8x128xf32> to vector<8x32xf32>
    %48 = arith.mulf %45, %14 : vector<8x32xf32>
    %49 = arith.mulf %44, %46 : vector<8x32xf32>
    %50 = arith.addf %48, %49 : vector<8x32xf32>
    %51 = math.tanh %50 : vector<8x32xf32>
    %52 = arith.mulf %47, %51 : vector<8x32xf32>
    %53 = vector.extract_strided_slice %6 {offsets = [8, 0], sizes = [8, 128], strides = [1, 1]} : vector<64x128xf32> to vector<8x128xf32>
    %cst_23 = arith.constant dense<0.000000e+00> : vector<8x128xf32>
    %54 = tpu.matmul %32, %7, %cst_23 {dimension_numbers = #tpu.dot_dimension_numbers<[1], [0], [0], [1], [0, 0, 1, 1], [], []>} : vector<8x32xf32>, vector<32x128xf32>, vector<8x128xf32> -> vector<8x128xf32>
    %55 = arith.addf %53, %54 : vector<8x128xf32>
    %56 = arith.negf %55 : vector<8x128xf32>
    %57 = math.exp %56 : vector<8x128xf32>
    %cst_24 = arith.constant 1.000000e+00 : f32
    %58 = vector.broadcast %cst_24 : f32 to vector<8x128xf32>
    %59 = arith.addf %58, %57 : vector<8x128xf32>
    %60 = arith.divf %58, %59 : vector<8x128xf32>
    %61 = math.tanh %55 : vector<8x128xf32>
    %62 = vector.extract_strided_slice %60 {offsets = [0, 0], sizes = [8, 32], strides = [1, 1]} : vector<8x128xf32> to vector<8x32xf32>
    %63 = vector.extract_strided_slice %60 {offsets = [0, 32], sizes = [8, 32], strides = [1, 1]} : vector<8x128xf32> to vector<8x32xf32>
    %64 = vector.extract_strided_slice %61 {offsets = [0, 64], sizes = [8, 32], strides = [1, 1]} : vector<8x128xf32> to vector<8x32xf32>
    %65 = vector.extract_strided_slice %60 {offsets = [0, 96], sizes = [8, 32], strides = [1, 1]} : vector<8x128xf32> to vector<8x32xf32>
    %66 = arith.mulf %63, %30 : vector<8x32xf32>
    %67 = arith.mulf %62, %64 : vector<8x32xf32>
    %68 = arith.addf %66, %67 : vector<8x32xf32>
    %69 = math.tanh %68 : vector<8x32xf32>
    %70 = arith.mulf %65, %69 : vector<8x32xf32>
    %cst_25 = arith.constant dense<0.000000e+00> : vector<8x128xf32>
    %71 = tpu.matmul %70, %9, %cst_25 {dimension_numbers = #tpu.dot_dimension_numbers<[1], [0], [0], [1], [0, 0, 1, 1], [], []>} : vector<8x32xf32>, vector<32x128xf32>, vector<8x128xf32> -> vector<8x128xf32>
    %cst_26 = arith.constant dense<0.000000e+00> : vector<8x128xf32>
    %72 = tpu.matmul %52, %8, %cst_26 {dimension_numbers = #tpu.dot_dimension_numbers<[1], [0], [0], [1], [0, 0, 1, 1], [], []>} : vector<8x32xf32>, vector<32x128xf32>, vector<8x128xf32> -> vector<8x128xf32>
    %73 = arith.addf %71, %72 : vector<8x128xf32>
    %74 = vector.broadcast %10 : vector<1x128xf32> to vector<8x128xf32>
    %75 = arith.addf %73, %74 : vector<8x128xf32>
    %76 = arith.negf %75 : vector<8x128xf32>
    %77 = math.exp %76 : vector<8x128xf32>
    %cst_27 = arith.constant 1.000000e+00 : f32
    %78 = vector.broadcast %cst_27 : f32 to vector<8x128xf32>
    %79 = arith.addf %78, %77 : vector<8x128xf32>
    %80 = arith.divf %78, %79 : vector<8x128xf32>
    %81 = math.tanh %75 : vector<8x128xf32>
    %82 = vector.extract_strided_slice %80 {offsets = [0, 0], sizes = [8, 32], strides = [1, 1]} : vector<8x128xf32> to vector<8x32xf32>
    %83 = vector.extract_strided_slice %80 {offsets = [0, 32], sizes = [8, 32], strides = [1, 1]} : vector<8x128xf32> to vector<8x32xf32>
    %84 = vector.extract_strided_slice %81 {offsets = [0, 64], sizes = [8, 32], strides = [1, 1]} : vector<8x128xf32> to vector<8x32xf32>
    %85 = vector.extract_strided_slice %80 {offsets = [0, 96], sizes = [8, 32], strides = [1, 1]} : vector<8x128xf32> to vector<8x32xf32>
    %86 = arith.mulf %83, %50 : vector<8x32xf32>
    %87 = arith.mulf %82, %84 : vector<8x32xf32>
    %88 = arith.addf %86, %87 : vector<8x32xf32>
    %89 = math.tanh %88 : vector<8x32xf32>
    %90 = arith.mulf %85, %89 : vector<8x32xf32>
    %91 = vector.extract_strided_slice %6 {offsets = [16, 0], sizes = [8, 128], strides = [1, 1]} : vector<64x128xf32> to vector<8x128xf32>
    %cst_28 = arith.constant dense<0.000000e+00> : vector<8x128xf32>
    %92 = tpu.matmul %70, %7, %cst_28 {dimension_numbers = #tpu.dot_dimension_numbers<[1], [0], [0], [1], [0, 0, 1, 1], [], []>} : vector<8x32xf32>, vector<32x128xf32>, vector<8x128xf32> -> vector<8x128xf32>
    %93 = arith.addf %91, %92 : vector<8x128xf32>
    %94 = arith.negf %93 : vector<8x128xf32>
    %95 = math.exp %94 : vector<8x128xf32>
    %cst_29 = arith.constant 1.000000e+00 : f32
    %96 = vector.broadcast %cst_29 : f32 to vector<8x128xf32>
    %97 = arith.addf %96, %95 : vector<8x128xf32>
    %98 = arith.divf %96, %97 : vector<8x128xf32>
    %99 = math.tanh %93 : vector<8x128xf32>
    %100 = vector.extract_strided_slice %98 {offsets = [0, 0], sizes = [8, 32], strides = [1, 1]} : vector<8x128xf32> to vector<8x32xf32>
    %101 = vector.extract_strided_slice %98 {offsets = [0, 32], sizes = [8, 32], strides = [1, 1]} : vector<8x128xf32> to vector<8x32xf32>
    %102 = vector.extract_strided_slice %99 {offsets = [0, 64], sizes = [8, 32], strides = [1, 1]} : vector<8x128xf32> to vector<8x32xf32>
    %103 = vector.extract_strided_slice %98 {offsets = [0, 96], sizes = [8, 32], strides = [1, 1]} : vector<8x128xf32> to vector<8x32xf32>
    %104 = arith.mulf %101, %68 : vector<8x32xf32>
    %105 = arith.mulf %100, %102 : vector<8x32xf32>
    %106 = arith.addf %104, %105 : vector<8x32xf32>
    %107 = math.tanh %106 : vector<8x32xf32>
    %108 = arith.mulf %103, %107 : vector<8x32xf32>
    %cst_30 = arith.constant dense<0.000000e+00> : vector<8x128xf32>
    %109 = tpu.matmul %108, %9, %cst_30 {dimension_numbers = #tpu.dot_dimension_numbers<[1], [0], [0], [1], [0, 0, 1, 1], [], []>} : vector<8x32xf32>, vector<32x128xf32>, vector<8x128xf32> -> vector<8x128xf32>
    %cst_31 = arith.constant dense<0.000000e+00> : vector<8x128xf32>
    %110 = tpu.matmul %90, %8, %cst_31 {dimension_numbers = #tpu.dot_dimension_numbers<[1], [0], [0], [1], [0, 0, 1, 1], [], []>} : vector<8x32xf32>, vector<32x128xf32>, vector<8x128xf32> -> vector<8x128xf32>
    %111 = arith.addf %109, %110 : vector<8x128xf32>
    %112 = vector.broadcast %10 : vector<1x128xf32> to vector<8x128xf32>
    %113 = arith.addf %111, %112 : vector<8x128xf32>
    %114 = arith.negf %113 : vector<8x128xf32>
    %115 = math.exp %114 : vector<8x128xf32>
    %cst_32 = arith.constant 1.000000e+00 : f32
    %116 = vector.broadcast %cst_32 : f32 to vector<8x128xf32>
    %117 = arith.addf %116, %115 : vector<8x128xf32>
    %118 = arith.divf %116, %117 : vector<8x128xf32>
    %119 = math.tanh %113 : vector<8x128xf32>
    %120 = vector.extract_strided_slice %118 {offsets = [0, 0], sizes = [8, 32], strides = [1, 1]} : vector<8x128xf32> to vector<8x32xf32>
    %121 = vector.extract_strided_slice %118 {offsets = [0, 32], sizes = [8, 32], strides = [1, 1]} : vector<8x128xf32> to vector<8x32xf32>
    %122 = vector.extract_strided_slice %119 {offsets = [0, 64], sizes = [8, 32], strides = [1, 1]} : vector<8x128xf32> to vector<8x32xf32>
    %123 = vector.extract_strided_slice %118 {offsets = [0, 96], sizes = [8, 32], strides = [1, 1]} : vector<8x128xf32> to vector<8x32xf32>
    %124 = arith.mulf %121, %88 : vector<8x32xf32>
    %125 = arith.mulf %120, %122 : vector<8x32xf32>
    %126 = arith.addf %124, %125 : vector<8x32xf32>
    %127 = math.tanh %126 : vector<8x32xf32>
    %128 = arith.mulf %123, %127 : vector<8x32xf32>
    %129 = vector.extract_strided_slice %6 {offsets = [24, 0], sizes = [8, 128], strides = [1, 1]} : vector<64x128xf32> to vector<8x128xf32>
    %cst_33 = arith.constant dense<0.000000e+00> : vector<8x128xf32>
    %130 = tpu.matmul %108, %7, %cst_33 {dimension_numbers = #tpu.dot_dimension_numbers<[1], [0], [0], [1], [0, 0, 1, 1], [], []>} : vector<8x32xf32>, vector<32x128xf32>, vector<8x128xf32> -> vector<8x128xf32>
    %131 = arith.addf %129, %130 : vector<8x128xf32>
    %132 = arith.negf %131 : vector<8x128xf32>
    %133 = math.exp %132 : vector<8x128xf32>
    %cst_34 = arith.constant 1.000000e+00 : f32
    %134 = vector.broadcast %cst_34 : f32 to vector<8x128xf32>
    %135 = arith.addf %134, %133 : vector<8x128xf32>
    %136 = arith.divf %134, %135 : vector<8x128xf32>
    %137 = math.tanh %131 : vector<8x128xf32>
    %138 = vector.extract_strided_slice %136 {offsets = [0, 0], sizes = [8, 32], strides = [1, 1]} : vector<8x128xf32> to vector<8x32xf32>
    %139 = vector.extract_strided_slice %136 {offsets = [0, 32], sizes = [8, 32], strides = [1, 1]} : vector<8x128xf32> to vector<8x32xf32>
    %140 = vector.extract_strided_slice %137 {offsets = [0, 64], sizes = [8, 32], strides = [1, 1]} : vector<8x128xf32> to vector<8x32xf32>
    %141 = vector.extract_strided_slice %136 {offsets = [0, 96], sizes = [8, 32], strides = [1, 1]} : vector<8x128xf32> to vector<8x32xf32>
    %142 = arith.mulf %139, %106 : vector<8x32xf32>
    %143 = arith.mulf %138, %140 : vector<8x32xf32>
    %144 = arith.addf %142, %143 : vector<8x32xf32>
    %145 = math.tanh %144 : vector<8x32xf32>
    %146 = arith.mulf %141, %145 : vector<8x32xf32>
    %cst_35 = arith.constant dense<0.000000e+00> : vector<8x128xf32>
    %147 = tpu.matmul %146, %9, %cst_35 {dimension_numbers = #tpu.dot_dimension_numbers<[1], [0], [0], [1], [0, 0, 1, 1], [], []>} : vector<8x32xf32>, vector<32x128xf32>, vector<8x128xf32> -> vector<8x128xf32>
    %cst_36 = arith.constant dense<0.000000e+00> : vector<8x128xf32>
    %148 = tpu.matmul %128, %8, %cst_36 {dimension_numbers = #tpu.dot_dimension_numbers<[1], [0], [0], [1], [0, 0, 1, 1], [], []>} : vector<8x32xf32>, vector<32x128xf32>, vector<8x128xf32> -> vector<8x128xf32>
    %149 = arith.addf %147, %148 : vector<8x128xf32>
    %150 = vector.broadcast %10 : vector<1x128xf32> to vector<8x128xf32>
    %151 = arith.addf %149, %150 : vector<8x128xf32>
    %152 = arith.negf %151 : vector<8x128xf32>
    %153 = math.exp %152 : vector<8x128xf32>
    %cst_37 = arith.constant 1.000000e+00 : f32
    %154 = vector.broadcast %cst_37 : f32 to vector<8x128xf32>
    %155 = arith.addf %154, %153 : vector<8x128xf32>
    %156 = arith.divf %154, %155 : vector<8x128xf32>
    %157 = math.tanh %151 : vector<8x128xf32>
    %158 = vector.extract_strided_slice %156 {offsets = [0, 0], sizes = [8, 32], strides = [1, 1]} : vector<8x128xf32> to vector<8x32xf32>
    %159 = vector.extract_strided_slice %156 {offsets = [0, 32], sizes = [8, 32], strides = [1, 1]} : vector<8x128xf32> to vector<8x32xf32>
    %160 = vector.extract_strided_slice %157 {offsets = [0, 64], sizes = [8, 32], strides = [1, 1]} : vector<8x128xf32> to vector<8x32xf32>
    %161 = vector.extract_strided_slice %156 {offsets = [0, 96], sizes = [8, 32], strides = [1, 1]} : vector<8x128xf32> to vector<8x32xf32>
    %162 = arith.mulf %159, %126 : vector<8x32xf32>
    %163 = arith.mulf %158, %160 : vector<8x32xf32>
    %164 = arith.addf %162, %163 : vector<8x32xf32>
    %165 = math.tanh %164 : vector<8x32xf32>
    %166 = arith.mulf %161, %165 : vector<8x32xf32>
    %167 = vector.extract_strided_slice %6 {offsets = [32, 0], sizes = [8, 128], strides = [1, 1]} : vector<64x128xf32> to vector<8x128xf32>
    %cst_38 = arith.constant dense<0.000000e+00> : vector<8x128xf32>
    %168 = tpu.matmul %146, %7, %cst_38 {dimension_numbers = #tpu.dot_dimension_numbers<[1], [0], [0], [1], [0, 0, 1, 1], [], []>} : vector<8x32xf32>, vector<32x128xf32>, vector<8x128xf32> -> vector<8x128xf32>
    %169 = arith.addf %167, %168 : vector<8x128xf32>
    %170 = arith.negf %169 : vector<8x128xf32>
    %171 = math.exp %170 : vector<8x128xf32>
    %cst_39 = arith.constant 1.000000e+00 : f32
    %172 = vector.broadcast %cst_39 : f32 to vector<8x128xf32>
    %173 = arith.addf %172, %171 : vector<8x128xf32>
    %174 = arith.divf %172, %173 : vector<8x128xf32>
    %175 = math.tanh %169 : vector<8x128xf32>
    %176 = vector.extract_strided_slice %174 {offsets = [0, 0], sizes = [8, 32], strides = [1, 1]} : vector<8x128xf32> to vector<8x32xf32>
    %177 = vector.extract_strided_slice %174 {offsets = [0, 32], sizes = [8, 32], strides = [1, 1]} : vector<8x128xf32> to vector<8x32xf32>
    %178 = vector.extract_strided_slice %175 {offsets = [0, 64], sizes = [8, 32], strides = [1, 1]} : vector<8x128xf32> to vector<8x32xf32>
    %179 = vector.extract_strided_slice %174 {offsets = [0, 96], sizes = [8, 32], strides = [1, 1]} : vector<8x128xf32> to vector<8x32xf32>
    %180 = arith.mulf %177, %144 : vector<8x32xf32>
    %181 = arith.mulf %176, %178 : vector<8x32xf32>
    %182 = arith.addf %180, %181 : vector<8x32xf32>
    %183 = math.tanh %182 : vector<8x32xf32>
    %184 = arith.mulf %179, %183 : vector<8x32xf32>
    %cst_40 = arith.constant dense<0.000000e+00> : vector<8x128xf32>
    %185 = tpu.matmul %184, %9, %cst_40 {dimension_numbers = #tpu.dot_dimension_numbers<[1], [0], [0], [1], [0, 0, 1, 1], [], []>} : vector<8x32xf32>, vector<32x128xf32>, vector<8x128xf32> -> vector<8x128xf32>
    %cst_41 = arith.constant dense<0.000000e+00> : vector<8x128xf32>
    %186 = tpu.matmul %166, %8, %cst_41 {dimension_numbers = #tpu.dot_dimension_numbers<[1], [0], [0], [1], [0, 0, 1, 1], [], []>} : vector<8x32xf32>, vector<32x128xf32>, vector<8x128xf32> -> vector<8x128xf32>
    %187 = arith.addf %185, %186 : vector<8x128xf32>
    %188 = vector.broadcast %10 : vector<1x128xf32> to vector<8x128xf32>
    %189 = arith.addf %187, %188 : vector<8x128xf32>
    %190 = arith.negf %189 : vector<8x128xf32>
    %191 = math.exp %190 : vector<8x128xf32>
    %cst_42 = arith.constant 1.000000e+00 : f32
    %192 = vector.broadcast %cst_42 : f32 to vector<8x128xf32>
    %193 = arith.addf %192, %191 : vector<8x128xf32>
    %194 = arith.divf %192, %193 : vector<8x128xf32>
    %195 = math.tanh %189 : vector<8x128xf32>
    %196 = vector.extract_strided_slice %194 {offsets = [0, 0], sizes = [8, 32], strides = [1, 1]} : vector<8x128xf32> to vector<8x32xf32>
    %197 = vector.extract_strided_slice %194 {offsets = [0, 32], sizes = [8, 32], strides = [1, 1]} : vector<8x128xf32> to vector<8x32xf32>
    %198 = vector.extract_strided_slice %195 {offsets = [0, 64], sizes = [8, 32], strides = [1, 1]} : vector<8x128xf32> to vector<8x32xf32>
    %199 = vector.extract_strided_slice %194 {offsets = [0, 96], sizes = [8, 32], strides = [1, 1]} : vector<8x128xf32> to vector<8x32xf32>
    %200 = arith.mulf %197, %164 : vector<8x32xf32>
    %201 = arith.mulf %196, %198 : vector<8x32xf32>
    %202 = arith.addf %200, %201 : vector<8x32xf32>
    %203 = math.tanh %202 : vector<8x32xf32>
    %204 = arith.mulf %199, %203 : vector<8x32xf32>
    %205 = vector.extract_strided_slice %6 {offsets = [40, 0], sizes = [8, 128], strides = [1, 1]} : vector<64x128xf32> to vector<8x128xf32>
    %cst_43 = arith.constant dense<0.000000e+00> : vector<8x128xf32>
    %206 = tpu.matmul %184, %7, %cst_43 {dimension_numbers = #tpu.dot_dimension_numbers<[1], [0], [0], [1], [0, 0, 1, 1], [], []>} : vector<8x32xf32>, vector<32x128xf32>, vector<8x128xf32> -> vector<8x128xf32>
    %207 = arith.addf %205, %206 : vector<8x128xf32>
    %208 = arith.negf %207 : vector<8x128xf32>
    %209 = math.exp %208 : vector<8x128xf32>
    %cst_44 = arith.constant 1.000000e+00 : f32
    %210 = vector.broadcast %cst_44 : f32 to vector<8x128xf32>
    %211 = arith.addf %210, %209 : vector<8x128xf32>
    %212 = arith.divf %210, %211 : vector<8x128xf32>
    %213 = math.tanh %207 : vector<8x128xf32>
    %214 = vector.extract_strided_slice %212 {offsets = [0, 0], sizes = [8, 32], strides = [1, 1]} : vector<8x128xf32> to vector<8x32xf32>
    %215 = vector.extract_strided_slice %212 {offsets = [0, 32], sizes = [8, 32], strides = [1, 1]} : vector<8x128xf32> to vector<8x32xf32>
    %216 = vector.extract_strided_slice %213 {offsets = [0, 64], sizes = [8, 32], strides = [1, 1]} : vector<8x128xf32> to vector<8x32xf32>
    %217 = vector.extract_strided_slice %212 {offsets = [0, 96], sizes = [8, 32], strides = [1, 1]} : vector<8x128xf32> to vector<8x32xf32>
    %218 = arith.mulf %215, %182 : vector<8x32xf32>
    %219 = arith.mulf %214, %216 : vector<8x32xf32>
    %220 = arith.addf %218, %219 : vector<8x32xf32>
    %221 = math.tanh %220 : vector<8x32xf32>
    %222 = arith.mulf %217, %221 : vector<8x32xf32>
    %cst_45 = arith.constant dense<0.000000e+00> : vector<8x128xf32>
    %223 = tpu.matmul %222, %9, %cst_45 {dimension_numbers = #tpu.dot_dimension_numbers<[1], [0], [0], [1], [0, 0, 1, 1], [], []>} : vector<8x32xf32>, vector<32x128xf32>, vector<8x128xf32> -> vector<8x128xf32>
    %cst_46 = arith.constant dense<0.000000e+00> : vector<8x128xf32>
    %224 = tpu.matmul %204, %8, %cst_46 {dimension_numbers = #tpu.dot_dimension_numbers<[1], [0], [0], [1], [0, 0, 1, 1], [], []>} : vector<8x32xf32>, vector<32x128xf32>, vector<8x128xf32> -> vector<8x128xf32>
    %225 = arith.addf %223, %224 : vector<8x128xf32>
    %226 = vector.broadcast %10 : vector<1x128xf32> to vector<8x128xf32>
    %227 = arith.addf %225, %226 : vector<8x128xf32>
    %228 = arith.negf %227 : vector<8x128xf32>
    %229 = math.exp %228 : vector<8x128xf32>
    %cst_47 = arith.constant 1.000000e+00 : f32
    %230 = vector.broadcast %cst_47 : f32 to vector<8x128xf32>
    %231 = arith.addf %230, %229 : vector<8x128xf32>
    %232 = arith.divf %230, %231 : vector<8x128xf32>
    %233 = math.tanh %227 : vector<8x128xf32>
    %234 = vector.extract_strided_slice %232 {offsets = [0, 0], sizes = [8, 32], strides = [1, 1]} : vector<8x128xf32> to vector<8x32xf32>
    %235 = vector.extract_strided_slice %232 {offsets = [0, 32], sizes = [8, 32], strides = [1, 1]} : vector<8x128xf32> to vector<8x32xf32>
    %236 = vector.extract_strided_slice %233 {offsets = [0, 64], sizes = [8, 32], strides = [1, 1]} : vector<8x128xf32> to vector<8x32xf32>
    %237 = vector.extract_strided_slice %232 {offsets = [0, 96], sizes = [8, 32], strides = [1, 1]} : vector<8x128xf32> to vector<8x32xf32>
    %238 = arith.mulf %235, %202 : vector<8x32xf32>
    %239 = arith.mulf %234, %236 : vector<8x32xf32>
    %240 = arith.addf %238, %239 : vector<8x32xf32>
    %241 = math.tanh %240 : vector<8x32xf32>
    %242 = arith.mulf %237, %241 : vector<8x32xf32>
    %243 = vector.extract_strided_slice %6 {offsets = [48, 0], sizes = [8, 128], strides = [1, 1]} : vector<64x128xf32> to vector<8x128xf32>
    %cst_48 = arith.constant dense<0.000000e+00> : vector<8x128xf32>
    %244 = tpu.matmul %222, %7, %cst_48 {dimension_numbers = #tpu.dot_dimension_numbers<[1], [0], [0], [1], [0, 0, 1, 1], [], []>} : vector<8x32xf32>, vector<32x128xf32>, vector<8x128xf32> -> vector<8x128xf32>
    %245 = arith.addf %243, %244 : vector<8x128xf32>
    %246 = arith.negf %245 : vector<8x128xf32>
    %247 = math.exp %246 : vector<8x128xf32>
    %cst_49 = arith.constant 1.000000e+00 : f32
    %248 = vector.broadcast %cst_49 : f32 to vector<8x128xf32>
    %249 = arith.addf %248, %247 : vector<8x128xf32>
    %250 = arith.divf %248, %249 : vector<8x128xf32>
    %251 = math.tanh %245 : vector<8x128xf32>
    %252 = vector.extract_strided_slice %250 {offsets = [0, 0], sizes = [8, 32], strides = [1, 1]} : vector<8x128xf32> to vector<8x32xf32>
    %253 = vector.extract_strided_slice %250 {offsets = [0, 32], sizes = [8, 32], strides = [1, 1]} : vector<8x128xf32> to vector<8x32xf32>
    %254 = vector.extract_strided_slice %251 {offsets = [0, 64], sizes = [8, 32], strides = [1, 1]} : vector<8x128xf32> to vector<8x32xf32>
    %255 = vector.extract_strided_slice %250 {offsets = [0, 96], sizes = [8, 32], strides = [1, 1]} : vector<8x128xf32> to vector<8x32xf32>
    %256 = arith.mulf %253, %220 : vector<8x32xf32>
    %257 = arith.mulf %252, %254 : vector<8x32xf32>
    %258 = arith.addf %256, %257 : vector<8x32xf32>
    %259 = math.tanh %258 : vector<8x32xf32>
    %260 = arith.mulf %255, %259 : vector<8x32xf32>
    %cst_50 = arith.constant dense<0.000000e+00> : vector<8x128xf32>
    %261 = tpu.matmul %260, %9, %cst_50 {dimension_numbers = #tpu.dot_dimension_numbers<[1], [0], [0], [1], [0, 0, 1, 1], [], []>} : vector<8x32xf32>, vector<32x128xf32>, vector<8x128xf32> -> vector<8x128xf32>
    %cst_51 = arith.constant dense<0.000000e+00> : vector<8x128xf32>
    %262 = tpu.matmul %242, %8, %cst_51 {dimension_numbers = #tpu.dot_dimension_numbers<[1], [0], [0], [1], [0, 0, 1, 1], [], []>} : vector<8x32xf32>, vector<32x128xf32>, vector<8x128xf32> -> vector<8x128xf32>
    %263 = arith.addf %261, %262 : vector<8x128xf32>
    %264 = vector.broadcast %10 : vector<1x128xf32> to vector<8x128xf32>
    %265 = arith.addf %263, %264 : vector<8x128xf32>
    %266 = arith.negf %265 : vector<8x128xf32>
    %267 = math.exp %266 : vector<8x128xf32>
    %cst_52 = arith.constant 1.000000e+00 : f32
    %268 = vector.broadcast %cst_52 : f32 to vector<8x128xf32>
    %269 = arith.addf %268, %267 : vector<8x128xf32>
    %270 = arith.divf %268, %269 : vector<8x128xf32>
    %271 = math.tanh %265 : vector<8x128xf32>
    %272 = vector.extract_strided_slice %270 {offsets = [0, 0], sizes = [8, 32], strides = [1, 1]} : vector<8x128xf32> to vector<8x32xf32>
    %273 = vector.extract_strided_slice %270 {offsets = [0, 32], sizes = [8, 32], strides = [1, 1]} : vector<8x128xf32> to vector<8x32xf32>
    %274 = vector.extract_strided_slice %271 {offsets = [0, 64], sizes = [8, 32], strides = [1, 1]} : vector<8x128xf32> to vector<8x32xf32>
    %275 = vector.extract_strided_slice %270 {offsets = [0, 96], sizes = [8, 32], strides = [1, 1]} : vector<8x128xf32> to vector<8x32xf32>
    %276 = arith.mulf %273, %240 : vector<8x32xf32>
    %277 = arith.mulf %272, %274 : vector<8x32xf32>
    %278 = arith.addf %276, %277 : vector<8x32xf32>
    %279 = math.tanh %278 : vector<8x32xf32>
    %280 = arith.mulf %275, %279 : vector<8x32xf32>
    %281 = vector.extract_strided_slice %6 {offsets = [56, 0], sizes = [8, 128], strides = [1, 1]} : vector<64x128xf32> to vector<8x128xf32>
    %cst_53 = arith.constant dense<0.000000e+00> : vector<8x128xf32>
    %282 = tpu.matmul %260, %7, %cst_53 {dimension_numbers = #tpu.dot_dimension_numbers<[1], [0], [0], [1], [0, 0, 1, 1], [], []>} : vector<8x32xf32>, vector<32x128xf32>, vector<8x128xf32> -> vector<8x128xf32>
    %283 = arith.addf %281, %282 : vector<8x128xf32>
    %284 = arith.negf %283 : vector<8x128xf32>
    %285 = math.exp %284 : vector<8x128xf32>
    %cst_54 = arith.constant 1.000000e+00 : f32
    %286 = vector.broadcast %cst_54 : f32 to vector<8x128xf32>
    %287 = arith.addf %286, %285 : vector<8x128xf32>
    %288 = arith.divf %286, %287 : vector<8x128xf32>
    %289 = math.tanh %283 : vector<8x128xf32>
    %290 = vector.extract_strided_slice %288 {offsets = [0, 0], sizes = [8, 32], strides = [1, 1]} : vector<8x128xf32> to vector<8x32xf32>
    %291 = vector.extract_strided_slice %288 {offsets = [0, 32], sizes = [8, 32], strides = [1, 1]} : vector<8x128xf32> to vector<8x32xf32>
    %292 = vector.extract_strided_slice %289 {offsets = [0, 64], sizes = [8, 32], strides = [1, 1]} : vector<8x128xf32> to vector<8x32xf32>
    %293 = vector.extract_strided_slice %288 {offsets = [0, 96], sizes = [8, 32], strides = [1, 1]} : vector<8x128xf32> to vector<8x32xf32>
    %294 = arith.mulf %291, %258 : vector<8x32xf32>
    %295 = arith.mulf %290, %292 : vector<8x32xf32>
    %296 = arith.addf %294, %295 : vector<8x32xf32>
    %297 = math.tanh %296 : vector<8x32xf32>
    %298 = arith.mulf %293, %297 : vector<8x32xf32>
    %cst_55 = arith.constant dense<0.000000e+00> : vector<8x128xf32>
    %299 = tpu.matmul %298, %9, %cst_55 {dimension_numbers = #tpu.dot_dimension_numbers<[1], [0], [0], [1], [0, 0, 1, 1], [], []>} : vector<8x32xf32>, vector<32x128xf32>, vector<8x128xf32> -> vector<8x128xf32>
    %cst_56 = arith.constant dense<0.000000e+00> : vector<8x128xf32>
    %300 = tpu.matmul %280, %8, %cst_56 {dimension_numbers = #tpu.dot_dimension_numbers<[1], [0], [0], [1], [0, 0, 1, 1], [], []>} : vector<8x32xf32>, vector<32x128xf32>, vector<8x128xf32> -> vector<8x128xf32>
    %301 = arith.addf %299, %300 : vector<8x128xf32>
    %302 = vector.broadcast %10 : vector<1x128xf32> to vector<8x128xf32>
    %303 = arith.addf %301, %302 : vector<8x128xf32>
    %304 = arith.negf %303 : vector<8x128xf32>
    %305 = math.exp %304 : vector<8x128xf32>
    %cst_57 = arith.constant 1.000000e+00 : f32
    %306 = vector.broadcast %cst_57 : f32 to vector<8x128xf32>
    %307 = arith.addf %306, %305 : vector<8x128xf32>
    %308 = arith.divf %306, %307 : vector<8x128xf32>
    %309 = math.tanh %303 : vector<8x128xf32>
    %310 = vector.extract_strided_slice %308 {offsets = [0, 0], sizes = [8, 32], strides = [1, 1]} : vector<8x128xf32> to vector<8x32xf32>
    %311 = vector.extract_strided_slice %308 {offsets = [0, 32], sizes = [8, 32], strides = [1, 1]} : vector<8x128xf32> to vector<8x32xf32>
    %312 = vector.extract_strided_slice %309 {offsets = [0, 64], sizes = [8, 32], strides = [1, 1]} : vector<8x128xf32> to vector<8x32xf32>
    %313 = vector.extract_strided_slice %308 {offsets = [0, 96], sizes = [8, 32], strides = [1, 1]} : vector<8x128xf32> to vector<8x32xf32>
    %314 = arith.mulf %311, %278 : vector<8x32xf32>
    %315 = arith.mulf %310, %312 : vector<8x32xf32>
    %316 = arith.addf %314, %315 : vector<8x32xf32>
    %317 = math.tanh %316 : vector<8x32xf32>
    %318 = arith.mulf %313, %317 : vector<8x32xf32>
    %c0_58 = arith.constant 0 : index
    %c0_59 = arith.constant 0 : index
    %319 = vector.load %arg8[%c0_58, %c0_59] : memref<32x128xf32, #tpu.memory_space<vmem>>, vector<32x128xf32>
    %cst_60 = arith.constant dense<0.000000e+00> : vector<8x128xf32>
    %320 = tpu.matmul %318, %319, %cst_60 {dimension_numbers = #tpu.dot_dimension_numbers<[1], [0], [0], [1], [0, 0, 1, 1], [], []>} : vector<8x32xf32>, vector<32x128xf32>, vector<8x128xf32> -> vector<8x128xf32>
    %c0_61 = arith.constant 0 : index
    %c0_62 = arith.constant 0 : index
    %321 = vector.load %arg9[%c0_61, %c0_62] : memref<1x128xf32, #tpu.memory_space<vmem>>, vector<1x128xf32>
    %322 = vector.broadcast %321 : vector<1x128xf32> to vector<8x128xf32>
    %323 = arith.addf %320, %322 : vector<8x128xf32>
    %c0_63 = arith.constant 0 : index
    %c0_64 = arith.constant 0 : index
    %324 = vector.load %arg10[%c0_63, %c0_64] : memref<8x128xf32, #tpu.memory_space<vmem>>, vector<8x128xf32>
    tpu.vector_store %arg10[%c0_63, %c0_64], %323 {strides = array<i32>} : memref<8x128xf32, #tpu.memory_space<vmem>>, vector<8x128xf32>,
    return
  }
  func.func @transform_0(%arg0: i32) -> (i32, i32, i32) {
    %c0_i32 = arith.constant 0 : i32
    %c0_i32_0 = arith.constant 0 : i32
    %c0_i32_1 = arith.constant 0 : i32
    return %c0_i32, %arg0, %c0_i32_0 : i32, i32, i32
  }
  func.func @transform_1(%arg0: i32) -> (i32, i32) {
    %c0_i32 = arith.constant 0 : i32
    %c0_i32_0 = arith.constant 0 : i32
    %c0_i32_1 = arith.constant 0 : i32
    return %c0_i32, %c0_i32_0 : i32, i32
  }
  func.func @transform_2(%arg0: i32) -> (i32, i32) {
    %c0_i32 = arith.constant 0 : i32
    %c0_i32_0 = arith.constant 0 : i32
    %c0_i32_1 = arith.constant 0 : i32
    return %c0_i32, %c0_i32_0 : i32, i32
  }
  func.func @transform_3(%arg0: i32) -> (i32, i32) {
    %c0_i32 = arith.constant 0 : i32
    %c0_i32_0 = arith.constant 0 : i32
    %c0_i32_1 = arith.constant 0 : i32
    return %c0_i32, %c0_i32_0 : i32, i32
  }
  func.func @transform_4(%arg0: i32) -> (i32, i32) {
    %c0_i32 = arith.constant 0 : i32
    %c0_i32_0 = arith.constant 0 : i32
    %c0_i32_1 = arith.constant 0 : i32
    return %c0_i32, %c0_i32_0 : i32, i32
  }
  func.func @transform_5(%arg0: i32) -> (i32, i32) {
    %c0_i32 = arith.constant 0 : i32
    %c0_i32_0 = arith.constant 0 : i32
    %c0_i32_1 = arith.constant 0 : i32
    return %c0_i32, %c0_i32_0 : i32, i32
  }
  func.func @transform_6(%arg0: i32) -> (i32, i32) {
    %c0_i32 = arith.constant 0 : i32
    %c0_i32_0 = arith.constant 0 : i32
    %c0_i32_1 = arith.constant 0 : i32
    return %c0_i32, %c0_i32_0 : i32, i32
  }
  func.func @transform_7(%arg0: i32) -> (i32, i32) {
    %c0_i32 = arith.constant 0 : i32
    %c0_i32_0 = arith.constant 0 : i32
    %c0_i32_1 = arith.constant 0 : i32
    return %c0_i32, %c0_i32_0 : i32, i32
  }
  func.func @transform_8(%arg0: i32) -> (i32, i32) {
    %c0_i32 = arith.constant 0 : i32
    %c0_i32_0 = arith.constant 0 : i32
    %c0_i32_1 = arith.constant 0 : i32
    return %c0_i32, %c0_i32_0 : i32, i32
  }
  func.func @transform_9(%arg0: i32) -> (i32, i32) {
    %c0_i32 = arith.constant 0 : i32
    %c0_i32_0 = arith.constant 0 : i32
    return %arg0, %c0_i32 : i32, i32
  }
}

</mosaic_0001>

<bundles_post_ra>
// kernel: tpu_custom_call.1
= control target key start
LH: loop header
LB: loop body
LE: loop exit
PB: predicated region body
PF: predicated region fallthrough
CT: control target
= control target key end

     0   :  { %14 = vsyncpa [#allocation3], 0  ;;  %s3895_s0 = inlined_call_operand.hbm [shape: f32[8,8,8], index: 0, kind: input, shape index: {}]   ;;  %s3896_s1 = inlined_call_operand.hbm [shape: f32[8,128], index: 1, kind: input, shape index: {}]   ;;  %s3897_s2 = inlined_call_operand.hbm [shape: f32[32,128], index: 2, kind: input, shape index: {}]   ;;  %s3898_s3 = inlined_call_operand.vmem [shape: f32[1,128], index: 3, kind: input, shape index: {}]   ;;  %s3899_s4 = inlined_call_operand.hbm [shape: f32[32,128], index: 4, kind: input, shape index: {}]   ;;  %s3900_s5 = inlined_call_operand.hbm [shape: f32[32,128], index: 5, kind: input, shape index: {}]   ;;  %s3901_s6 = inlined_call_operand.vmem [shape: f32[1,128], index: 6, kind: input, shape index: {}]   ;;  %s3902_s7 = inlined_call_operand.hbm [shape: f32[32,128], index: 7, kind: input, shape index: {}]   ;;  %s3903_s8 = inlined_call_operand.vmem [shape: f32[1,128], index: 8, kind: input, shape index: {}]   ;;  %s3904_s9 = inlined_call_operand.hbm [shape: f32[8,128], index: 9, kind: output, shape index: {}]  }
   0x1   :  { %15 = vsyncpa [#allocation6], 0 }
   0x2   :  { %16 = vsyncpa [#allocation9], 0 }
   0x3   :  { %17 = vsyncpa [#allocation12], 0 }
   0x4   :  { %18 = vsyncpa [#allocation4], 0  ;;  %s3320_s30 = smov [#allocation5]  }
   0x5   :  { %s37_s10 = sshll.u32 %s3320_s30, 4  ;;  %s38_s10 = int_to_ptr.vmem [resolvable:$true] %s37_s10 }
   0x6   :  { %s3178_s11 = scalar_lea.vmem %s38_s10, 128  ;;  %p3183_p1 = scmp.lt.s32.totalorder %s38_s10, %s38_s10 }
   0x7   :  { %p3179_p0 = scmp.ne.s32.totalorder %s38_s10, %s3178_s11  ;;  %p3184_p2 = scmp.lt.s32.totalorder %s3178_s11, %s3178_s11 }
   0x9   :  { %p3185_p3 = por %p3184_p2, %p3183_p1 }
   0xb   :  { %p3186_p4 = pnand %p3185_p3, %p3179_p0 }
   0xd   :  { %3189 = shalt.err (!%p3186_p4)
}
   0xe   :  { %40 = dma.hbm_to_vmem [thread:$0]  %s3896_s1, 128, %s38_s10, [#allocation6]  }
   0xf   :  { %s3321_s14 = smov [#allocation8]   ;;  %s3322_s16 = smov [#allocation2]  }
  0x10   :  { %s60_s15 = sshll.u32 %s3321_s14, 4  ;;  %s24_s17 = sshll.u32 %s3322_s16, 4  ;;  %s61_s15 = int_to_ptr.vmem [resolvable:$true] %s60_s15  ;;  %s25_s17 = int_to_ptr.vmem [resolvable:$true] %s24_s17 }
  0x11   :  { %s3198_s18 = scalar_lea.vmem %s61_s15, 512  ;;  %p3203_p6 = scmp.lt.s32.totalorder %s61_s15, %s61_s15 }
  0x12   :  { %p3199_p5 = scmp.ne.s32.totalorder %s61_s15, %s3198_s18  ;;  %p3204_p7 = scmp.lt.s32.totalorder %s3198_s18, %s3198_s18 }
  0x14   :  { %p3205_p8 = por %p3204_p7, %p3203_p6 }
  0x16   :  { %p3206_p9 = pnand %p3205_p8, %p3199_p5 }
  0x18   :  { %3209 = shalt.err (!%p3206_p9)
}
  0x19   :  { %s3323_s19 = smov 128   ;;  %s3324_s20 = smov 8  }
  0x1a   :  { %66 = dma.hbm_to_vmem [thread:$0]  %s3899_s4, 512, %s61_s15, [#allocation9], %s3323_s19, %s3323_s19, %s3324_s20  }
  0x1b   :  { %s3218_s1 = scalar_lea.vmem %s25_s17, 1024  ;;  %p3223_p11 = scmp.lt.s32.totalorder %s25_s17, %s25_s17 }
  0x1c   :  { %p3219_p10 = scmp.ne.s32.totalorder %s25_s17, %s3218_s1  ;;  %p3224_p12 = scmp.lt.s32.totalorder %s3218_s1, %s3218_s1 }
  0x1e   :  { %p3225_p13 = por %p3224_p12, %p3223_p11 }
  0x20   :  { %p3226_p0 = pnand %p3225_p13, %p3219_p10 }
  0x22   :  { %3229 = shalt.err (!%p3226_p0)
}
  0x23   :  { %30 = dma.hbm_to_vmem [thread:$0]  %s3895_s0, 1024, %s25_s17, [#allocation3], %s3323_s19, %s3323_s19, %s3324_s20  }
  0x24   :  { %s3325_s25 = smov [#allocation7]   ;;  %s3326_s27 = smov [#allocation10]  }
  0x25   :  { %s46_s26 = sshll.u32 %s3325_s25, 4  ;;  %s72_s4 = sshll.u32 %s3326_s27, 4  ;;  %s47_s26 = int_to_ptr.vmem [resolvable:$true] %s46_s26  ;;  %s73_s4 = int_to_ptr.vmem [resolvable:$true] %s72_s4 }
  0x26   :  { %s3238_s28 = scalar_lea.vmem %s47_s26, 512  ;;  %p3243_p2 = scmp.lt.s32.totalorder %s47_s26, %s47_s26 }
  0x27   :  { %p3239_p1 = scmp.ne.s32.totalorder %s47_s26, %s3238_s28  ;;  %p3244_p3 = scmp.lt.s32.totalorder %s3238_s28, %s3238_s28 }
  0x29   :  { %p3245_p4 = por %p3244_p3, %p3243_p2 }
  0x2b   :  { %p3246_p5 = pnand %p3245_p4, %p3239_p1 }
  0x2d   :  { %3249 = shalt.err (!%p3246_p5)
}
  0x2e   :  { %52 = dma.hbm_to_vmem [thread:$0]  %s3897_s2, 512, %s47_s26, [#allocation6], %s3323_s19, %s3323_s19, %s3324_s20  }
  0x2f   :  { %s3258_s0 = scalar_lea.vmem %s73_s4, 512  ;;  %p3263_p7 = scmp.lt.s32.totalorder %s73_s4, %s73_s4 }
  0x30   :  { %p3259_p6 = scmp.ne.s32.totalorder %s73_s4, %s3258_s0  ;;  %p3264_p8 = scmp.lt.s32.totalorder %s3258_s0, %s3258_s0 }
  0x32   :  { %p3265_p9 = por %p3264_p8, %p3263_p7 }
  0x34   :  { %p3266_p10 = pnand %p3265_p9, %p3259_p6 }
  0x36   :  { %3269 = shalt.err (!%p3266_p10)
}
  0x37   :  { %78 = dma.hbm_to_vmem [thread:$0]  %s3900_s5, 512, %s73_s4, [#allocation9], %s3323_s19, %s3323_s19, %s3324_s20  }
  0x38   :  { %s3327_s12 = smov [#allocation11]  }
  0x39   :  { %s86_s13 = sshll.u32 %s3327_s12, 4  ;;  %s87_s13 = int_to_ptr.vmem [resolvable:$true] %s86_s13 }
  0x3a   :  { %s3278_s14 = scalar_lea.vmem %s87_s13, 512  ;;  %p3283_p12 = scmp.lt.s32.totalorder %s87_s13, %s87_s13 }
  0x3b   :  { %p3279_p11 = scmp.ne.s32.totalorder %s87_s13, %s3278_s14  ;;  %p3284_p13 = scmp.lt.s32.totalorder %s3278_s14, %s3278_s14 }
  0x3d   :  { %p3285_p0 = por %p3284_p13, %p3283_p12 }
  0x3f   :  { %p3286_p1 = pnand %p3285_p0, %p3279_p11 }
  0x41   :  { %3289 = shalt.err (!%p3286_p1)
}
  0x42   :  { %92 = dma.hbm_to_vmem [thread:$0]  %s3902_s7, 512, %s87_s13, [#allocation12], %s3323_s19, %s3323_s19, %s3324_s20  }
  0x43   :  { %3310 = dma.done.wait [#allocation3], 1024  }
  0x44   :  { %3311 = vsyncadd [#allocation3], 4294966272 }
  0x45   :  { %3312 = dma.done.wait [#allocation6], 640  }
  0x46   :  { %3313 = vsyncadd [#allocation6], 4294966656 }
  0x47   :  { %3314 = dma.done.wait [#allocation9], 1024  }
  0x48   :  { %3315 = vsyncadd [#allocation9], 4294966272 }
  0x49   :  { %3316 = dma.done.wait [#allocation12], 512  }
  0x4a   :  { %3317 = vsyncadd [#allocation12], 4294966784  ;;  %v3328_v0 = vmov 0.0   ;;  %vm3329_vm0 = vmmov 0   ;;  %vm129_vm1 = vcmask 64512   ;;  %v121_v1 = vld [vmem:[#allocation5] sm:$0xff] }
  0x4b   :  { %2740 = vmatprep.subr.mxu1 %v3328_v0  ;;  %2748 = vmatprep.mubr.msk.f32.mxu1 %vm3329_vm0, %v3328_v0  ;;  %v3419_v2 = vld [vmem:[#allocation7 + $0x18] sm:$0xff]  ;;  %v114_v4 = vld [vmem:[#allocation2 + $0x8] sm:$0xff]  ;;  %v3422_v5 = vld [vmem:[#allocation7 + $0x10] sm:$0xff]  ;;  %s3330_s16 = smov 64   ;;  %s3331_s17 = smov 32   ;;  %vm272_vm2 = vcmask 261120  }
  0x4c   :  { %v113_v3 = vld [vmem:[#allocation2] sm:$0xff]  ;;  %2726 = vmatprep.subr.mxu0 %v121_v1  ;;  %2741 = vmatpush3.msra.mxu1 %v3419_v2  ;;  %v3427_v6 = vld [vmem:[#allocation7 + $0x8] sm:$0xff]  ;;  %v3432_v7 = vld [vmem:[#allocation7] sm:$0xff]  ;;  %s3332_s23 = smov [#allocation13]  }
  0x4d   :  { %2727 = vmatpush3.msra.mxu0 %v121_v1  ;;  %2728 = vmatprep.mubr.msk.f32.mxu0 %vm129_vm1, %v113_v3  ;;  %v3446_v9 = vld [vmem:[%s3898_s3] ss:$0 sm:$0xff]  ;;  %v115_v26 = vld [vmem:[#allocation2 + $0x10] sm:$0xff]  ;;  %v116_v28 = vld [vmem:[#allocation2 + $0x18] sm:$0xff]  ;;  %s2530_s24 = sshll.u32 %s3332_s23, 4  ;;  %s2531_s24 = int_to_ptr.vmem [resolvable:$true] %s2530_s24 }
  0x4e   :  { %2742 = vmatprep.subr.mxu1 %v3328_v0  ;;  %2729 = vmatmul.mubr.msk.f32.vlgmr.msra.gmra.mxu0 %vm129_vm1, %v114_v4  ;;  %v3454_v25 = vld [vmem:[#allocation8 + $0x18] sm:$0xff]  ;;  %v3460_v29 = vld [vmem:[#allocation10 + $0x10] sm:$0xff]  ;;  %v3468_v32 = vld [vmem:[#allocation10 + $0x8] sm:$0xff]  ;;  %s3290_s25 = scalar_lea.vmem %s2531_s24, 128  ;;  %p3295_p3 = scmp.lt.s32.totalorder %s2531_s24, %s2531_s24 }
  0x4f   :  { %2743 = vmatpush3.msra.mxu1 %v3422_v5  ;;  %2762 = vmatprep.subr.mxu0 %v3328_v0  ;;  %v3456_v27 = vld [vmem:[#allocation10 + $0x18] sm:$0xff]  ;;  %v3462_v30 = vld [vmem:[#allocation8 + $0x10] sm:$0xff]  ;;  %v118_v33 = vld [vmem:[#allocation2 + $0x28] sm:$0xff]  ;;  %p3291_p2 = scmp.ne.s32.totalorder %s2531_s24, %s3290_s25  ;;  %p3296_p4 = scmp.lt.s32.totalorder %s3290_s25, %s3290_s25 }
  0x50   :  { %2744 = vmatprep.subr.mxu1 %v3328_v0  ;;  %2763 = vmatpush3.msra.mxu0 %v3454_v25  ;;  %v117_v31 = vld [vmem:[#allocation2 + $0x20] sm:$0xff]  ;;  %v3474_v34 = vld [vmem:[#allocation10] sm:$0xff]  ;;  %v3476_v35 = vld [vmem:[#allocation8 + $0x8] sm:$0xff] }
  0x51   :  { %2745 = vmatpush3.msra.mxu1 %v3427_v6  ;;  %2731 = vmatprep.mubr.msk.f32.mxu0 %vm129_vm1, %v115_v26  ;;  %v119_v36 = vld [vmem:[#allocation2 + $0x30] sm:$0xff]  ;;  %v120_v37 = vld [vmem:[#allocation2 + $0x38] sm:$0xff]  ;;  %v3488_v39 = vld [vmem:[#allocation8] sm:$0xff]  ;;  %p3297_p5 = por %p3296_p4, %p3295_p3 }
  0x52   :  { %2746 = vmatprep.subr.mxu1 %v3328_v0  ;;  %2732 = vmatmul.mubr.msk.f32.gmra.mxu0 %vm129_vm1, %v116_v28  ;;  %v3546_v52 = vld [vmem:[%s3901_s6] ss:$0 sm:$0xff] }
  0x53   :  { %2747 = vmatpush3.msra.mxu1 %v3432_v7  ;;  %2764 = vmatprep.subr.mxu0 %v3328_v0  ;;  %p3298_p6 = pnand %p3297_p5, %p3291_p2 }
  0x54   :  { %2749 = vmatmul.mubr.f32.vlgmr.msra.gmra.mxu1 %v3328_v0  ;;  %2751 = vmatprep.subr.mxu1 %v3328_v0 }
  0x55   :  { %2759 = vmatprep.mubr.msk.f32.mxu1 %vm3329_vm0, %v3328_v0  ;;  %2752 = vmatpush3.msra.mxu1 %v3456_v27 }
  0x56   :  { %2753 = vmatprep.subr.mxu1 %v3328_v0  ;;  %2765 = vmatpush3.msra.mxu0 %v3462_v30 }
  0x57   :  { %2754 = vmatpush3.msra.mxu1 %v3460_v29  ;;  %2734 = vmatprep.mubr.msk.f32.mxu0 %vm129_vm1, %v117_v31 }
  0x58   :  { %2755 = vmatprep.subr.mxu1 %v3328_v0  ;;  %2735 = vmatmul.mubr.msk.f32.gmra.mxu0 %vm129_vm1, %v118_v33 }
  0x59   :  { %2756 = vmatpush3.msra.mxu1 %v3468_v32  ;;  %2766 = vmatprep.subr.mxu0 %v3328_v0 }
  0x5a   :  { %2757 = vmatprep.subr.mxu1 %v3328_v0  ;;  %2767 = vmatpush3.msra.mxu0 %v3476_v35 }
  0x5b   :  { %2758 = vmatpush3.msra.mxu1 %v3474_v34  ;;  %2737 = vmatprep.mubr.msk.f32.mxu0 %vm129_vm1, %v119_v36 }
  0x5c   :  { %2773 = vmatprep.subr.mxu1 %v3328_v0  ;;  %2760 = vmatmul.mubr.f32.vlgmr.msra.gmra.mxu1 %v3328_v0 }
  0x5d   :  { %2738 = vmatmul.mubr.msk.f32.gmra.mxu0 %vm129_vm1, %v120_v37  ;;  %2774 = vmatpush3.msra.mxu1 %v3419_v2 }
  0x5e   :  { %2775 = vmatprep.subr.mxu1 %v3328_v0  ;;  %2768 = vmatprep.subr.mxu0 %v3328_v0 }
  0x5f   :  { %2776 = vmatpush3.msra.mxu1 %v3422_v5  ;;  %2769 = vmatpush3.msra.mxu0 %v3488_v39 }
  0x60   :  { %2777 = vmatprep.subr.mxu1 %v3328_v0  ;;  %2770 = vmatprep.mubr.msk.f32.mxu0 %vm3329_vm0, %v3328_v0 }
  0x61   :  { %2778 = vmatpush3.msra.mxu1 %v3427_v6  ;;  %2781 = vmatprep.mubr.msk.f32.mxu1 %vm3329_vm0, %v3328_v0 }
  0x62   :  { %2779 = vmatprep.subr.mxu1 %v3328_v0  ;;  %2784 = vmatprep.subr.mxu0 %v3328_v0 }
  0x63   :  { %2780 = vmatpush3.msra.mxu1 %v3432_v7 }
  0x64   :  { %2795 = vmatprep.subr.mxu1 %v3328_v0 }
 0x10e   :  { %v3441_v8 = vpop.f32.mrf.mxu0 }
 0x10f   :  { %v226_v51 = vadd.f32 %v3441_v8, %v3446_v9 }
 0x110   :  { %v220_v10 = vpop.f32.mrf.mxu0 }
 0x111   :  { %v221_v11 = vadd.f32 %v3446_v9, %v220_v10 }
 0x112   :  { %v3529_v45 = vpop.f32.mrf.mxu0 }
 0x114   :  { %v342_v12 = vpop.f32.mrf.mxu1  ;;  %v3531_v46 = vpop.f32.mrf.mxu0 }
 0x115   :  { %v346_v13 = vadd.f32 %v342_v12, %v221_v11 }
 0x116   :  { %v2750_v14 = vpop.f32.mrf.mxu1 }
 0x117   :  { %3028 = vtanh.f32 %v346_v13  ;;  %v2551_v16 = vmul.f32 -1.442695, %v346_v13 }
 0x118   :  { %v3533_v47 = vpop.f32.mrf.mxu0 }
 0x119   :  { %3030 = vpow2.f32 %v2551_v16 }
 0x11a   :  { %v3535_v48 = vpop.f32.mrf.mxu0 }
 0x11c   :  { %v437_v42 = vpop.f32.mrf.mxu1 }
 0x11d   :  { %v3537_v49 = vpop.f32.mrf.mxu0 }
 0x11e   :  { %v2761_v43 = vpop.f32.mrf.mxu1 }
 0x11f   :  { %v3539_v50 = vpop.f32.mrf.mxu0 }
 0x124   :  { %v3029_v15 = vpop.eup %3028 }
 0x125   :  { %356 = vrot.lane.b32.xlu0 %v3029_v15, %s3330_s16 }
 0x126   :  { %v3031_v17 = vpop.eup %3030 }
 0x127   :  { %v350_v18 = vadd.f32 1.0, %v3031_v17 }
 0x129   :  { %3032 = vrcp.f32 %v350_v18 }
 0x136   :  { %v3033_v19 = vpop.eup %3032 }
 0x137   :  { %v354_v22 = vmul.f32 0.0, %v3033_v19 }
 0x197   :  { %v357_v20 = vpop.permute.xlu0 %356 }
 0x198   :  { %v359_v21 = vmul.f32 %v3033_v19, %v357_v20 }
 0x19a   :  { %361 = vrot.lane.b32.xlu0 %v359_v21, %s3331_s17 }
 0x20c   :  { %v362_v23 = vpop.permute.xlu0 %361 }
 0x20d   :  { %v3451_v24 = vadd.f32 %v362_v23, %v354_v22 }
 0x20f   :  { %3034 = vtanh.f32 %v3451_v24 }
 0x21c   :  { %v3035_v38 = vpop.eup %3034 }
 0x21d   :  { %367 = vrot.lane.b32.xlu1 %v3035_v38, %s3330_s16 }
 0x28f   :  { %v368_v40 = vpop.permute.xlu1 %367 }
 0x290   :  { %v370_v41 = vmul.f32 %v3033_v19, %v368_v40 }
 0x292   :  { %442 = vrot.lane.b32.xlu1 %v370_v41, %s3331_s17 }
 0x304   :  { %v443_v44 = vpop.permute.xlu1 %442 }
 0x305   :  { %2771 = vmatmul.mubr.msk.f32.vlgmr.msra.gmra.mxu0 %vm272_vm2, %v443_v44  ;;  %2782 = vmatmul.mubr.msk.f32.vlgmr.msra.gmra.mxu1 %vm272_vm2, %v443_v44  ;;  %v231_v44 = vadd.f32 %v3446_v9, %v3531_v46 }
 0x306   :  { %2796 = vmatpush3.msra.mxu1 %v3454_v25  ;;  %2785 = vmatpush3.msra.mxu0 %v3456_v27 }
 0x307   :  { %2797 = vmatprep.subr.mxu1 %v3328_v0  ;;  %2786 = vmatprep.subr.mxu0 %v3328_v0 }
 0x308   :  { %2798 = vmatpush3.msra.mxu1 %v3462_v30  ;;  %2787 = vmatpush3.msra.mxu0 %v3460_v29 }
 0x309   :  { %2799 = vmatprep.subr.mxu1 %v3328_v0  ;;  %2788 = vmatprep.subr.mxu0 %v3328_v0 }
 0x30a   :  { %2800 = vmatpush3.msra.mxu1 %v3476_v35  ;;  %2789 = vmatpush3.msra.mxu0 %v3468_v32 }
 0x30b   :  { %2801 = vmatprep.subr.mxu1 %v3328_v0  ;;  %2803 = vmatprep.mubr.msk.f32.mxu1 %vm3329_vm0, %v3328_v0 }
 0x30c   :  { %2802 = vmatpush3.msra.mxu1 %v3488_v39  ;;  %2790 = vmatprep.subr.mxu0 %v3328_v0 }
 0x30d   :  { %2791 = vmatpush3.msra.mxu0 %v3474_v34  ;;  %2792 = vmatprep.mubr.msk.f32.mxu0 %vm3329_vm0, %v3328_v0 }
 0x30e   :  { %2806 = vmatprep.subr.mxu0 %v3328_v0  ;;  %2817 = vmatprep.subr.mxu1 %v3328_v0 }
 0x3c5   :  { %v512_v53 = vpop.f32.mrf.mxu0  ;;  %v613_v54 = vpop.f32.mrf.mxu1 }
 0x3c6   :  { %v513_v55 = vadd.f32 %v512_v53, %v437_v42  ;;  %v617_v56 = vadd.f32 %v613_v54, %v226_v51 }
 0x3c7   :  { %v2772_v57 = vpop.f32.mrf.mxu0  ;;  %v2783_v58 = vpop.f32.mrf.mxu1 }
 0x3c8   :  { %v522_v59 = vadd.f32 %v3546_v52, %v513_v55  ;;  %3036 = vtanh.f32 %v617_v56  ;;  %v2556_v62 = vmul.f32 -1.442695, %v617_v56 }
 0x3ca   :  { %3038 = vtanh.f32 %v522_v59  ;;  %v2554_v63 = vmul.f32 -1.442695, %v522_v59 }
 0x3cb   :  { %3040 = vpow2.f32 %v2556_v62 }
 0x3cc   :  { %3042 = vpow2.f32 %v2554_v63 }
 0x3d5   :  { %v3037_v60 = vpop.eup %3036 }
 0x3d6   :  { %627 = vrot.lane.b32.xlu1 %v3037_v60, %s3330_s16 }
 0x3d7   :  { %v3039_v61 = vpop.eup %3038 }
 0x3d8   :  { %532 = vrot.lane.b32.xlu0 %v3039_v61, %s3330_s16  ;;  %v3041_v1 = vpop.eup %3040 }
 0x3d9   :  { %v3043_v3 = vpop.eup %3042  ;;  %v621_v4 = vadd.f32 1.0, %v3041_v1 }
 0x3da   :  { %v526_v8 = vadd.f32 1.0, %v3043_v3 }
 0x3db   :  { %3044 = vrcp.f32 %v621_v4 }
 0x3dc   :  { %3046 = vrcp.f32 %v526_v8 }
 0x3e8   :  { %v3045_v10 = vpop.eup %3044 }
 0x3e9   :  { %v3047_v13 = vpop.eup %3046  ;;  %v625_v16 = vmul.f32 %v3045_v10, %v3451_v24 }
 0x3ea   :  { %v530_v19 = vmul.f32 0.0, %v3047_v13 }
 0x448   :  { %v628_v11 = vpop.permute.xlu1 %627 }
 0x449   :  { %v630_v12 = vmul.f32 %v3045_v10, %v628_v11 }
 0x44a   :  { %v533_v14 = vpop.permute.xlu0 %532 }
 0x44b   :  { %v535_v15 = vmul.f32 %v3047_v13, %v533_v14  ;;  %632 = vrot.lane.b32.xlu1 %v630_v12, %s3331_s17 }
 0x44d   :  { %537 = vrot.lane.b32.xlu0 %v535_v15, %s3331_s17 }
 0x4bd   :  { %v633_v17 = vpop.permute.xlu1 %632 }
 0x4be   :  { %v3554_v18 = vadd.f32 %v633_v17, %v625_v16 }
 0x4bf   :  { %v538_v20 = vpop.permute.xlu0 %537 }
 0x4c0   :  { %3048 = vtanh.f32 %v3554_v18  ;;  %v3557_v21 = vadd.f32 %v538_v20, %v530_v19 }
 0x4c2   :  { %3050 = vtanh.f32 %v3557_v21 }
 0x4cd   :  { %v3049_v22 = vpop.eup %3048 }
 0x4ce   :  { %638 = vrot.lane.b32.xlu1 %v3049_v22, %s3330_s16 }
 0x4cf   :  { %v3051_v23 = vpop.eup %3050 }
 0x4d0   :  { %543 = vrot.lane.b32.xlu0 %v3051_v23, %s3330_s16 }
 0x540   :  { %v639_v26 = vpop.permute.xlu1 %638 }
 0x541   :  { %v641_v28 = vmul.f32 %v3045_v10, %v639_v26 }
 0x542   :  { %v544_v24 = vpop.permute.xlu0 %543 }
 0x543   :  { %v546_v31 = vmul.f32 %v3047_v13, %v544_v24  ;;  %718 = vrot.lane.b32.xlu1 %v641_v28, %s3331_s17 }
 0x545   :  { %643 = vrot.lane.b32.xlu0 %v546_v31, %s3331_s17  ;;  %v236_v31 = vadd.f32 %v3529_v45, %v3446_v9 }
 0x5b5   :  { %v719_v33 = vpop.permute.xlu1 %718 }
 0x5b6   :  { %2804 = vmatmul.mubr.msk.f32.vlgmr.msra.gmra.mxu1 %vm272_vm2, %v719_v33 }
 0x5b7   :  { %v644_v36 = vpop.permute.xlu0 %643  ;;  %2818 = vmatpush3.msra.mxu1 %v3456_v27  ;;  %2825 = vmatprep.mubr.msk.f32.mxu1 %vm3329_vm0, %v3328_v0 }
 0x5b8   :  { %2793 = vmatmul.mubr.msk.f32.vlgmr.msra.gmra.mxu0 %vm272_vm2, %v644_v36  ;;  %2819 = vmatprep.subr.mxu1 %v3328_v0 }
 0x5b9   :  { %2807 = vmatpush3.msra.mxu0 %v3419_v2  ;;  %2814 = vmatprep.mubr.msk.f32.mxu0 %vm3329_vm0, %v3328_v0 }
 0x5ba   :  { %2808 = vmatprep.subr.mxu0 %v3328_v0  ;;  %2820 = vmatpush3.msra.mxu1 %v3460_v29 }
 0x5bb   :  { %2809 = vmatpush3.msra.mxu0 %v3422_v5  ;;  %2821 = vmatprep.subr.mxu1 %v3328_v0 }
 0x5bc   :  { %2810 = vmatprep.subr.mxu0 %v3328_v0  ;;  %2822 = vmatpush3.msra.mxu1 %v3468_v32 }
 0x5bd   :  { %2811 = vmatpush3.msra.mxu0 %v3427_v6  ;;  %2823 = vmatprep.subr.mxu1 %v3328_v0 }
 0x5be   :  { %2812 = vmatprep.subr.mxu0 %v3328_v0  ;;  %2824 = vmatpush3.msra.mxu1 %v3474_v34 }
 0x5bf   :  { %2813 = vmatpush3.msra.mxu0 %v3432_v7  ;;  %2839 = vmatprep.subr.mxu1 %v3328_v0 }
 0x5c0   :  { %2815 = vmatmul.mubr.msk.f32.vlgmr.msra.gmra.mxu0 %vm272_vm2, %v719_v33  ;;  %2828 = vmatprep.subr.mxu0 %v3328_v0 }
 0x5c1   :  { %2829 = vmatpush3.msra.mxu0 %v3454_v25  ;;  %2836 = vmatprep.mubr.msk.f32.mxu0 %vm3329_vm0, %v3328_v0 }
 0x5c2   :  { %2830 = vmatprep.subr.mxu0 %v3328_v0 }
 0x5c3   :  { %2831 = vmatpush3.msra.mxu0 %v3462_v30 }
 0x5c4   :  { %2832 = vmatprep.subr.mxu0 %v3328_v0 }
 0x5c5   :  { %2833 = vmatpush3.msra.mxu0 %v3476_v35 }
 0x5c6   :  { %2834 = vmatprep.subr.mxu0 %v3328_v0 }
 0x5c7   :  { %2835 = vmatpush3.msra.mxu0 %v3488_v39 }
 0x5c8   :  { %2850 = vmatprep.subr.mxu0 %v3328_v0 }
 0x676   :  { %v788_v37 = vpop.f32.mrf.mxu1 }
 0x678   :  { %v713_v38 = vpop.f32.mrf.mxu0  ;;  %v2805_v40 = vpop.f32.mrf.mxu1 }
 0x679   :  { %v789_v41 = vadd.f32 %v788_v37, %v713_v38 }
 0x67a   :  { %v2794_v42 = vpop.f32.mrf.mxu0 }
 0x67b   :  { %v792_v43 = vadd.f32 %v3546_v52, %v789_v41 }
 0x67d   :  { %3052 = vtanh.f32 %v792_v43  ;;  %v2559_v57 = vmul.f32 -1.442695, %v792_v43 }
 0x680   :  { %v883_v51 = vpop.f32.mrf.mxu0 }
 0x681   :  { %v887_v53 = vadd.f32 %v883_v51, %v231_v44 }
 0x682   :  { %v2816_v54 = vpop.f32.mrf.mxu0 }
 0x683   :  { %3054 = vtanh.f32 %v887_v53  ;;  %v2561_v58 = vmul.f32 -1.442695, %v887_v53 }
 0x684   :  { %3056 = vpow2.f32 %v2559_v57 }
 0x685   :  { %3058 = vpow2.f32 %v2561_v58 }
 0x68a   :  { %v3053_v55 = vpop.eup %3052 }
 0x68b   :  { %802 = vrot.lane.b32.xlu0 %v3053_v55, %s3330_s16 }
 0x690   :  { %v3055_v56 = vpop.eup %3054 }
 0x691   :  { %897 = vrot.lane.b32.xlu1 %v3055_v56, %s3330_s16  ;;  %v3057_v59 = vpop.eup %3056 }
 0x692   :  { %v796_v60 = vadd.f32 1.0, %v3057_v59  ;;  %v3059_v61 = vpop.eup %3058 }
 0x693   :  { %v891_v62 = vadd.f32 1.0, %v3059_v61 }
 0x694   :  { %3060 = vrcp.f32 %v796_v60 }
 0x695   :  { %3062 = vrcp.f32 %v891_v62 }
 0x6a1   :  { %v3061_v46 = vpop.eup %3060 }
 0x6a2   :  { %v3063_v3 = vpop.eup %3062  ;;  %v800_v10 = vmul.f32 %v3061_v46, %v3557_v21 }
 0x6a3   :  { %v895_v13 = vmul.f32 %v3063_v3, %v3554_v18 }
 0x6fd   :  { %v803_v63 = vpop.permute.xlu0 %802 }
 0x6fe   :  { %v805_v1 = vmul.f32 %v3061_v46, %v803_v63 }
 0x700   :  { %807 = vrot.lane.b32.xlu0 %v805_v1, %s3331_s17 }
 0x703   :  { %v898_v4 = vpop.permute.xlu1 %897 }
 0x704   :  { %v900_v8 = vmul.f32 %v3063_v3, %v898_v4 }
 0x706   :  { %902 = vrot.lane.b32.xlu1 %v900_v8, %s3331_s17 }
 0x772   :  { %v808_v11 = vpop.permute.xlu0 %807 }
 0x773   :  { %v3605_v12 = vadd.f32 %v808_v11, %v800_v10 }
 0x775   :  { %3064 = vtanh.f32 %v3605_v12 }
 0x778   :  { %v903_v14 = vpop.permute.xlu1 %902 }
 0x779   :  { %v3609_v15 = vadd.f32 %v903_v14, %v895_v13 }
 0x77b   :  { %3066 = vtanh.f32 %v3609_v15 }
 0x782   :  { %v3065_v16 = vpop.eup %3064 }
 0x783   :  { %813 = vrot.lane.b32.xlu0 %v3065_v16, %s3330_s16 }
 0x788   :  { %v3067_v17 = vpop.eup %3066 }
 0x789   :  { %908 = vrot.lane.b32.xlu1 %v3067_v17, %s3330_s16 }
 0x7f5   :  { %v814_v19 = vpop.permute.xlu0 %813 }
 0x7f6   :  { %v816_v20 = vmul.f32 %v3061_v46, %v814_v19 }
 0x7f8   :  { %913 = vrot.lane.b32.xlu0 %v816_v20, %s3331_s17 }
 0x7fb   :  { %v909_v21 = vpop.permute.xlu1 %908 }
 0x7fc   :  { %v911_v22 = vmul.f32 %v3063_v3, %v909_v21 }
 0x7fe   :  { %988 = vrot.lane.b32.xlu1 %v911_v22, %s3331_s17 }
 0x86a   :  { %v914_v18 = vpop.permute.xlu0 %913 }
 0x86b   :  { %2826 = vmatmul.mubr.msk.f32.vlgmr.msra.gmra.mxu1 %vm272_vm2, %v914_v18 }
 0x86c   :  { %2840 = vmatpush3.msra.mxu1 %v3419_v2  ;;  %2847 = vmatprep.mubr.msk.f32.mxu1 %vm3329_vm0, %v3328_v0 }
 0x86d   :  { %2841 = vmatprep.subr.mxu1 %v3328_v0 }
 0x86e   :  { %2842 = vmatpush3.msra.mxu1 %v3422_v5 }
 0x86f   :  { %2843 = vmatprep.subr.mxu1 %v3328_v0 }
 0x870   :  { %2844 = vmatpush3.msra.mxu1 %v3427_v6  ;;  %v989_v23 = vpop.permute.xlu1 %988 }
 0x871   :  { %2837 = vmatmul.mubr.msk.f32.vlgmr.msra.gmra.mxu0 %vm272_vm2, %v989_v23  ;;  %2845 = vmatprep.subr.mxu1 %v3328_v0 }
 0x872   :  { %2846 = vmatpush3.msra.mxu1 %v3432_v7  ;;  %2851 = vmatpush3.msra.mxu0 %v3456_v27 }
 0x873   :  { %2848 = vmatmul.mubr.msk.f32.vlgmr.msra.gmra.mxu1 %vm272_vm2, %v989_v23  ;;  %2861 = vmatprep.subr.mxu1 %v3328_v0  ;;  %v241_v23 = vadd.f32 %v3446_v9, %v3535_v48 }
 0x874   :  { %2852 = vmatprep.subr.mxu0 %v3328_v0  ;;  %2862 = vmatpush3.msra.mxu1 %v3454_v25 }
 0x875   :  { %2853 = vmatpush3.msra.mxu0 %v3460_v29  ;;  %2863 = vmatprep.subr.mxu1 %v3328_v0 }
 0x876   :  { %2854 = vmatprep.subr.mxu0 %v3328_v0  ;;  %2864 = vmatpush3.msra.mxu1 %v3462_v30 }
 0x877   :  { %2855 = vmatpush3.msra.mxu0 %v3468_v32  ;;  %2865 = vmatprep.subr.mxu1 %v3328_v0 }
 0x878   :  { %2856 = vmatprep.subr.mxu0 %v3328_v0  ;;  %2866 = vmatpush3.msra.mxu1 %v3476_v35 }
 0x879   :  { %2857 = vmatpush3.msra.mxu0 %v3474_v34  ;;  %2867 = vmatprep.subr.mxu1 %v3328_v0 }
 0x87a   :  { %2868 = vmatpush3.msra.mxu1 %v3488_v39  ;;  %2869 = vmatprep.mubr.msk.f32.mxu1 %vm3329_vm0, %v3328_v0 }
 0x87b   :  { %2858 = vmatprep.mubr.msk.f32.mxu0 %vm3329_vm0, %v3328_v0  ;;  %2872 = vmatprep.subr.mxu0 %v3328_v0 }
 0x87c   :  { %2883 = vmatprep.subr.mxu1 %v3328_v0 }
 0x92b   :  { %v983_v26 = vpop.f32.mrf.mxu1 }
 0x92d   :  { %v2827_v28 = vpop.f32.mrf.mxu1 }
 0x931   :  { %v1058_v24 = vpop.f32.mrf.mxu0 }
 0x932   :  { %v1059_v33 = vadd.f32 %v1058_v24, %v983_v26 }
 0x933   :  { %v2838_v36 = vpop.f32.mrf.mxu0  ;;  %v1153_v37 = vpop.f32.mrf.mxu1 }
 0x934   :  { %v1062_v38 = vadd.f32 %v3546_v52, %v1059_v33  ;;  %v1157_v40 = vadd.f32 %v1153_v37, %v236_v31 }
 0x935   :  { %v2849_v41 = vpop.f32.mrf.mxu1 }
 0x936   :  { %3068 = vtanh.f32 %v1062_v38  ;;  %v2564_v44 = vmul.f32 -1.442695, %v1062_v38  ;;  %v2566_v51 = vmul.f32 -1.442695, %v1157_v40 }
 0x937   :  { %3070 = vtanh.f32 %v1157_v40 }
 0x938   :  { %3072 = vpow2.f32 %v2564_v44 }
 0x939   :  { %3074 = vpow2.f32 %v2566_v51 }
 0x943   :  { %v3069_v42 = vpop.eup %3068 }
 0x944   :  { %v3071_v43 = vpop.eup %3070  ;;  %1072 = vrot.lane.b32.xlu0 %v3069_v42, %s3330_s16 }
 0x945   :  { %1167 = vrot.lane.b32.xlu1 %v3071_v43, %s3330_s16  ;;  %v3073_v45 = vpop.eup %3072 }
 0x946   :  { %v3075_v53 = vpop.eup %3074  ;;  %v1066_v54 = vadd.f32 1.0, %v3073_v45 }
 0x947   :  { %v1161_v55 = vadd.f32 1.0, %v3075_v53 }
 0x948   :  { %3076 = vrcp.f32 %v1066_v54 }
 0x949   :  { %3078 = vrcp.f32 %v1161_v55 }
 0x955   :  { %v3077_v56 = vpop.eup %3076 }
 0x956   :  { %v3079_v58 = vpop.eup %3078  ;;  %v1070_v62 = vmul.f32 %v3077_v56, %v3605_v12 }
 0x957   :  { %v1165_v46 = vmul.f32 %v3079_v58, %v3609_v15 }
 0x9b6   :  { %v1073_v57 = vpop.permute.xlu0 %1072 }
 0x9b7   :  { %v1168_v59 = vpop.permute.xlu1 %1167  ;;  %v1075_v60 = vmul.f32 %v3077_v56, %v1073_v57 }
 0x9b8   :  { %v1170_v61 = vmul.f32 %v3079_v58, %v1168_v59 }
 0x9b9   :  { %1077 = vrot.lane.b32.xlu0 %v1075_v60, %s3331_s17 }
 0x9ba   :  { %1172 = vrot.lane.b32.xlu1 %v1170_v61, %s3331_s17 }
 0xa2b   :  { %v1078_v63 = vpop.permute.xlu0 %1077 }
 0xa2c   :  { %v1173_v1 = vpop.permute.xlu1 %1172  ;;  %v3658_v3 = vadd.f32 %v1078_v63, %v1070_v62 }
 0xa2d   :  { %v3660_v4 = vadd.f32 %v1173_v1, %v1165_v46 }
 0xa2e   :  { %3080 = vtanh.f32 %v3658_v3 }
 0xa2f   :  { %3082 = vtanh.f32 %v3660_v4 }
 0xa3b   :  { %v3081_v8 = vpop.eup %3080 }
 0xa3c   :  { %v3083_v10 = vpop.eup %3082  ;;  %1083 = vrot.lane.b32.xlu0 %v3081_v8, %s3330_s16  ;;  %v246_v8 = vadd.f32 %v3533_v47, %v3446_v9 }
 0xa3d   :  { %1178 = vrot.lane.b32.xlu1 %v3083_v10, %s3330_s16 }
 0xaae   :  { %v1084_v11 = vpop.permute.xlu0 %1083 }
 0xaaf   :  { %v1179_v12 = vpop.permute.xlu1 %1178  ;;  %v1086_v13 = vmul.f32 %v3077_v56, %v1084_v11 }
 0xab0   :  { %v1181_v14 = vmul.f32 %v3079_v58, %v1179_v12 }
 0xab1   :  { %1183 = vrot.lane.b32.xlu0 %v1086_v13, %s3331_s17 }
 0xab2   :  { %1258 = vrot.lane.b32.xlu1 %v1181_v14, %s3331_s17 }
 0xb23   :  { %v1184_v15 = vpop.permute.xlu0 %1183 }
 0xb24   :  { %v1259_v16 = vpop.permute.xlu1 %1258  ;;  %2859 = vmatmul.mubr.msk.f32.vlgmr.msra.gmra.mxu0 %vm272_vm2, %v1184_v15 }
 0xb25   :  { %2870 = vmatmul.mubr.msk.f32.vlgmr.msra.gmra.mxu1 %vm272_vm2, %v1259_v16  ;;  %2873 = vmatpush3.msra.mxu0 %v3419_v2 }
 0xb26   :  { %2874 = vmatprep.subr.mxu0 %v3328_v0  ;;  %2880 = vmatprep.mubr.msk.f32.mxu0 %vm3329_vm0, %v3328_v0 }
 0xb27   :  { %2875 = vmatpush3.msra.mxu0 %v3422_v5  ;;  %2884 = vmatpush3.msra.mxu1 %v3456_v27 }
 0xb28   :  { %2876 = vmatprep.subr.mxu0 %v3328_v0  ;;  %2885 = vmatprep.subr.mxu1 %v3328_v0 }
 0xb29   :  { %2877 = vmatpush3.msra.mxu0 %v3427_v6  ;;  %2886 = vmatpush3.msra.mxu1 %v3460_v29 }
 0xb2a   :  { %2878 = vmatprep.subr.mxu0 %v3328_v0  ;;  %2887 = vmatprep.subr.mxu1 %v3328_v0 }
 0xb2b   :  { %2879 = vmatpush3.msra.mxu0 %v3432_v7  ;;  %2888 = vmatpush3.msra.mxu1 %v3468_v32 }
 0xb2c   :  { %2881 = vmatmul.mubr.msk.f32.vlgmr.msra.gmra.mxu0 %vm272_vm2, %v1259_v16  ;;  %2889 = vmatprep.subr.mxu1 %v3328_v0 }
 0xb2d   :  { %2894 = vmatprep.subr.mxu0 %v3328_v0  ;;  %2890 = vmatpush3.msra.mxu1 %v3474_v34 }
 0xb2e   :  { %2895 = vmatpush3.msra.mxu0 %v3454_v25  ;;  %2891 = vmatprep.mubr.msk.f32.mxu1 %vm3329_vm0, %v3328_v0 }
 0xb2f   :  { %2896 = vmatprep.subr.mxu0 %v3328_v0  ;;  %2905 = vmatprep.subr.mxu1 %v3328_v0 }
 0xb30   :  { %2897 = vmatpush3.msra.mxu0 %v3462_v30  ;;  %2902 = vmatprep.mubr.msk.f32.mxu0 %vm3329_vm0, %v3328_v0 }
 0xb31   :  { %2898 = vmatprep.subr.mxu0 %v3328_v0 }
 0xb32   :  { %2899 = vmatpush3.msra.mxu0 %v3476_v35 }
 0xb33   :  { %2900 = vmatprep.subr.mxu0 %v3328_v0 }
 0xb34   :  { %2901 = vmatpush3.msra.mxu0 %v3488_v39 }
 0xb35   :  { %2916 = vmatprep.subr.mxu0 %v3328_v0 }
 0xbe4   :  { %v1253_v17 = vpop.f32.mrf.mxu0 }
 0xbe5   :  { %v1328_v19 = vpop.f32.mrf.mxu1 }
 0xbe6   :  { %v1329_v20 = vadd.f32 %v1328_v19, %v1253_v17  ;;  %v2860_v21 = vpop.f32.mrf.mxu0 }
 0xbe7   :  { %v2871_v22 = vpop.f32.mrf.mxu1 }
 0xbe8   :  { %v1332_v18 = vadd.f32 %v3546_v52, %v1329_v20 }
 0xbea   :  { %3084 = vtanh.f32 %v1332_v18  ;;  %v2569_v36 = vmul.f32 -1.442695, %v1332_v18 }
 0xbec   :  { %v1423_v26 = vpop.f32.mrf.mxu0 }
 0xbed   :  { %v1427_v28 = vadd.f32 %v1423_v26, %v241_v23 }
 0xbee   :  { %v2882_v24 = vpop.f32.mrf.mxu0 }
 0xbef   :  { %3086 = vtanh.f32 %v1427_v28  ;;  %v2571_v37 = vmul.f32 -1.442695, %v1427_v28 }
 0xbf0   :  { %3088 = vpow2.f32 %v2569_v36 }
 0xbf1   :  { %3090 = vpow2.f32 %v2571_v37 }
 0xbf7   :  { %v3085_v31 = vpop.eup %3084 }
 0xbf8   :  { %1342 = vrot.lane.b32.xlu0 %v3085_v31, %s3330_s16 }
 0xbfc   :  { %v3087_v33 = vpop.eup %3086 }
 0xbfd   :  { %1437 = vrot.lane.b32.xlu1 %v3087_v33, %s3330_s16  ;;  %v3089_v38 = vpop.eup %3088 }
 0xbfe   :  { %v1336_v40 = vadd.f32 1.0, %v3089_v38  ;;  %v3091_v41 = vpop.eup %3090 }
 0xbff   :  { %v1431_v42 = vadd.f32 1.0, %v3091_v41 }
 0xc00   :  { %3092 = vrcp.f32 %v1336_v40 }
 0xc01   :  { %3094 = vrcp.f32 %v1431_v42 }
 0xc0d   :  { %v3093_v48 = vpop.eup %3092 }
 0xc0e   :  { %v3095_v51 = vpop.eup %3094  ;;  %v1340_v54 = vmul.f32 %v3093_v48, %v3658_v3 }
 0xc0f   :  { %v1435_v57 = vmul.f32 %v3095_v51, %v3660_v4 }
 0xc6a   :  { %v1343_v43 = vpop.permute.xlu0 %1342 }
 0xc6b   :  { %v1345_v44 = vmul.f32 %v3093_v48, %v1343_v43 }
 0xc6d   :  { %1347 = vrot.lane.b32.xlu0 %v1345_v44, %s3331_s17 }
 0xc6f   :  { %v1438_v45 = vpop.permute.xlu1 %1437 }
 0xc70   :  { %v1440_v53 = vmul.f32 %v3095_v51, %v1438_v45 }
 0xc72   :  { %1442 = vrot.lane.b32.xlu1 %v1440_v53, %s3331_s17 }
 0xcdf   :  { %v1348_v55 = vpop.permute.xlu0 %1347 }
 0xce0   :  { %v3709_v56 = vadd.f32 %v1348_v55, %v1340_v54  ;;  %v3774_v54 = vld [vmem:[#allocation7 + $0x18] sm:$0xff]  ;;  %v3780_v55 = vld [vmem:[#allocation7 + $0x10] sm:$0xff] }
 0xce2   :  { %3096 = vtanh.f32 %v3709_v56 }
 0xce4   :  { %v1443_v58 = vpop.permute.xlu1 %1442 }
 0xce5   :  { %v3713_v59 = vadd.f32 %v1443_v58, %v1435_v57  ;;  %v3792_v57 = vld [vmem:[#allocation7] sm:$0xff]  ;;  %v3817_v58 = vld [vmem:[%s3898_s3] ss:$0 sm:$0xff] }
 0xce7   :  { %3098 = vtanh.f32 %v3713_v59 }
 0xcef   :  { %v3097_v60 = vpop.eup %3096 }
 0xcf0   :  { %1353 = vrot.lane.b32.xlu0 %v3097_v60, %s3330_s16 }
 0xcf4   :  { %v3099_v61 = vpop.eup %3098 }
 0xcf5   :  { %1448 = vrot.lane.b32.xlu1 %v3099_v61, %s3330_s16 }
 0xd62   :  { %v1354_v62 = vpop.permute.xlu0 %1353 }
 0xd63   :  { %v1356_v46 = vmul.f32 %v3093_v48, %v1354_v62 }
 0xd65   :  { %1453 = vrot.lane.b32.xlu0 %v1356_v46, %s3331_s17 }
 0xd67   :  { %v1449_v63 = vpop.permute.xlu1 %1448 }
 0xd68   :  { %v1451_v1 = vmul.f32 %v3095_v51, %v1449_v63 }
 0xd6a   :  { %1528 = vrot.lane.b32.xlu1 %v1451_v1, %s3331_s17 }
 0xdd7   :  { %v1454_v3 = vpop.permute.xlu0 %1453 }
 0xdd8   :  { %2892 = vmatmul.mubr.msk.f32.vlgmr.msra.gmra.mxu1 %vm272_vm2, %v1454_v3 }
 0xdd9   :  { %2906 = vmatpush3.msra.mxu1 %v3419_v2  ;;  %2913 = vmatprep.mubr.msk.f32.mxu1 %vm3329_vm0, %v3328_v0 }
 0xdda   :  { %2907 = vmatprep.subr.mxu1 %v3328_v0 }
 0xddb   :  { %2908 = vmatpush3.msra.mxu1 %v3422_v5 }
 0xddc   :  { %2909 = vmatprep.subr.mxu1 %v3328_v0  ;;  %v1529_v4 = vpop.permute.xlu1 %1528 }
 0xddd   :  { %2910 = vmatpush3.msra.mxu1 %v3427_v6  ;;  %2903 = vmatmul.mubr.msk.f32.vlgmr.msra.gmra.mxu0 %vm272_vm2, %v1529_v4 }
 0xdde   :  { %2911 = vmatprep.subr.mxu1 %v3328_v0  ;;  %2917 = vmatpush3.msra.mxu0 %v3456_v27 }
 0xddf   :  { %2912 = vmatpush3.msra.mxu1 %v3432_v7  ;;  %2918 = vmatprep.subr.mxu0 %v3328_v0 }
 0xde0   :  { %2914 = vmatmul.mubr.msk.f32.vlgmr.msra.gmra.mxu1 %vm272_vm2, %v1529_v4  ;;  %2927 = vmatprep.subr.mxu1 %v3328_v0 }
 0xde1   :  { %2928 = vmatpush3.msra.mxu1 %v3454_v25  ;;  %2919 = vmatpush3.msra.mxu0 %v3460_v29 }
 0xde2   :  { %2929 = vmatprep.subr.mxu1 %v3328_v0  ;;  %2920 = vmatprep.subr.mxu0 %v3328_v0 }
 0xde3   :  { %2930 = vmatpush3.msra.mxu1 %v3462_v30  ;;  %2921 = vmatpush3.msra.mxu0 %v3468_v32 }
 0xde4   :  { %2931 = vmatprep.subr.mxu1 %v3328_v0  ;;  %2922 = vmatprep.subr.mxu0 %v3328_v0 }
 0xde5   :  { %2932 = vmatpush3.msra.mxu1 %v3476_v35  ;;  %2923 = vmatpush3.msra.mxu0 %v3474_v34 }
 0xde6   :  { %2933 = vmatprep.subr.mxu1 %v3328_v0  ;;  %2935 = vmatprep.mubr.msk.f32.mxu1 %vm3329_vm0, %v3328_v0 }
 0xde7   :  { %2934 = vmatpush3.msra.mxu1 %v3488_v39  ;;  %2924 = vmatprep.mubr.msk.f32.mxu0 %vm3329_vm0, %v3328_v0 }
 0xde8   :  { %2938 = vmatprep.subr.mxu0 %v3328_v0  ;;  %2949 = vmatprep.subr.mxu1 %v3328_v0 }
 0xe98   :  { %v1523_v2 = vpop.f32.mrf.mxu1 }
 0xe9a   :  { %v2893_v5 = vpop.f32.mrf.mxu1 }
 0xe9d   :  { %v1598_v6 = vpop.f32.mrf.mxu0 }
 0xe9e   :  { %v1599_v7 = vadd.f32 %v1598_v6, %v1523_v2 }
 0xe9f   :  { %v2904_v10 = vpop.f32.mrf.mxu0 }
 0xea0   :  { %v1602_v11 = vadd.f32 %v3546_v52, %v1599_v7  ;;  %v1693_v12 = vpop.f32.mrf.mxu1 }
 0xea1   :  { %v1697_v13 = vadd.f32 %v1693_v12, %v246_v8 }
 0xea2   :  { %3100 = vtanh.f32 %v1602_v11  ;;  %v2915_v14 = vpop.f32.mrf.mxu1  ;;  %v2574_v17 = vmul.f32 -1.442695, %v1602_v11 }
 0xea3   :  { %3102 = vtanh.f32 %v1697_v13  ;;  %v2576_v19 = vmul.f32 -1.442695, %v1697_v13 }
 0xea4   :  { %3104 = vpow2.f32 %v2574_v17 }
 0xea5   :  { %3106 = vpow2.f32 %v2576_v19 }
 0xeaf   :  { %v3101_v15 = vpop.eup %3100 }
 0xeb0   :  { %v3103_v16 = vpop.eup %3102  ;;  %1612 = vrot.lane.b32.xlu0 %v3101_v15, %s3330_s16 }
 0xeb1   :  { %1707 = vrot.lane.b32.xlu1 %v3103_v16, %s3330_s16  ;;  %v3105_v20 = vpop.eup %3104 }
 0xeb2   :  { %v3107_v9 = vpop.eup %3106  ;;  %v1606_v47 = vadd.f32 1.0, %v3105_v20 }
 0xeb3   :  { %v1701_v21 = vadd.f32 1.0, %v3107_v9 }
 0xeb4   :  { %3108 = vrcp.f32 %v1606_v47 }
 0xeb5   :  { %3110 = vrcp.f32 %v1701_v21 }
 0xec1   :  { %v3109_v22 = vpop.eup %3108 }
 0xec2   :  { %v3111_v23 = vpop.eup %3110  ;;  %v1610_v31 = vmul.f32 %v3109_v22, %v3709_v56  ;;  %v3786_v56 = vld [vmem:[#allocation7 + $0x8] sm:$0xff] }
 0xec3   :  { %v1705_v33 = vmul.f32 %v3111_v23, %v3713_v59 }
 0xf22   :  { %v1613_v18 = vpop.permute.xlu0 %1612 }
 0xf23   :  { %v1708_v26 = vpop.permute.xlu1 %1707  ;;  %v1615_v28 = vmul.f32 %v3109_v22, %v1613_v18 }
 0xf24   :  { %v1710_v24 = vmul.f32 %v3111_v23, %v1708_v26  ;;  %v3162_v26 = vld [vmem:[#allocation8 + $0x18] sm:$0xff] }
 0xf25   :  { %1617 = vrot.lane.b32.xlu0 %v1615_v28, %s3331_s17  ;;  %v3163_v28 = vld [vmem:[#allocation10 + $0x10] sm:$0xff] }
 0xf26   :  { %1712 = vrot.lane.b32.xlu1 %v1710_v24, %s3331_s17  ;;  %v3164_v24 = vld [vmem:[#allocation8 + $0x10] sm:$0xff] }
 0xf97   :  { %v1618_v36 = vpop.permute.xlu0 %1617 }
 0xf98   :  { %v1713_v37 = vpop.permute.xlu1 %1712  ;;  %v3762_v38 = vadd.f32 %v1618_v36, %v1610_v31  ;;  %v3165_v31 = vld [vmem:[#allocation10 + $0x8] sm:$0xff]  ;;  %v3167_v36 = vld [vmem:[#allocation10] sm:$0xff] }
 0xf99   :  { %v3764_v40 = vadd.f32 %v1713_v37, %v1705_v33  ;;  %v3166_v33 = vld [vmem:[#allocation8 + $0x8] sm:$0xff]  ;;  %v3168_v37 = vld [vmem:[#allocation8] sm:$0xff] }
 0xf9a   :  { %3112 = vtanh.f32 %v3762_v38 }
 0xf9b   :  { %3114 = vtanh.f32 %v3764_v40 }
 0xfa7   :  { %v3113_v41 = vpop.eup %3112 }
 0xfa8   :  { %v3115_v42 = vpop.eup %3114  ;;  %1623 = vrot.lane.b32.xlu0 %v3113_v41, %s3330_s16 }
 0xfa9   :  { %1718 = vrot.lane.b32.xlu1 %v3115_v42, %s3330_s16 }
0x101a   :  { %v1624_v48 = vpop.permute.xlu0 %1623 }
0x101b   :  { %v1719_v43 = vpop.permute.xlu1 %1718  ;;  %v1626_v44 = vmul.f32 %v3109_v22, %v1624_v48  ;;  %v256_v48 = vadd.f32 %v3817_v58, %v3537_v49 }
0x101c   :  { %v1721_v51 = vmul.f32 %v3111_v23, %v1719_v43  ;;  %v3161_v23 = vld [vmem:[#allocation10 + $0x18] sm:$0xff] }
0x101d   :  { %1723 = vrot.lane.b32.xlu0 %v1626_v44, %s3331_s17 }
0x101e   :  { %1798 = vrot.lane.b32.xlu1 %v1721_v51, %s3331_s17 }
0x108f   :  { %v1724_v45 = vpop.permute.xlu0 %1723 }
0x1090   :  { %v1799_v53 = vpop.permute.xlu1 %1798  ;;  %2925 = vmatmul.mubr.msk.f32.vlgmr.msra.gmra.mxu0 %vm272_vm2, %v1724_v45 }
0x1091   :  { %2936 = vmatmul.mubr.msk.f32.vlgmr.msra.gmra.mxu1 %vm272_vm2, %v1799_v53  ;;  %2939 = vmatpush3.msra.mxu0 %v3774_v54 }
0x1092   :  { %2940 = vmatprep.subr.mxu0 %v3328_v0  ;;  %2946 = vmatprep.mubr.msk.f32.mxu0 %vm3329_vm0, %v3328_v0 }
0x1093   :  { %2941 = vmatpush3.msra.mxu0 %v3780_v55  ;;  %2950 = vmatpush3.msra.mxu1 %v3456_v27 }
0x1094   :  { %2942 = vmatprep.subr.mxu0 %v3328_v0  ;;  %2951 = vmatprep.subr.mxu1 %v3328_v0 }
0x1095   :  { %2943 = vmatpush3.msra.mxu0 %v3786_v56  ;;  %2952 = vmatpush3.msra.mxu1 %v3460_v29 }
0x1096   :  { %2944 = vmatprep.subr.mxu0 %v3328_v0  ;;  %2953 = vmatprep.subr.mxu1 %v3328_v0 }
0x1097   :  { %2945 = vmatpush3.msra.mxu0 %v3792_v57  ;;  %2954 = vmatpush3.msra.mxu1 %v3468_v32 }
0x1098   :  { %2947 = vmatmul.mubr.msk.f32.vlgmr.msra.gmra.mxu0 %vm272_vm2, %v1799_v53  ;;  %2955 = vmatprep.subr.mxu1 %v3328_v0 }
0x1099   :  { %2960 = vmatprep.subr.mxu0 %v3328_v0  ;;  %2956 = vmatpush3.msra.mxu1 %v3474_v34 }
0x109a   :  { %2961 = vmatpush3.msra.mxu0 %v3454_v25  ;;  %2957 = vmatprep.mubr.msk.f32.mxu1 %vm3329_vm0, %v3328_v0 }
0x109b   :  { %2962 = vmatprep.subr.mxu0 %v3328_v0  ;;  %2971 = vmatprep.subr.mxu1 %v3328_v0 }
0x109c   :  { %2963 = vmatpush3.msra.mxu0 %v3462_v30  ;;  %2968 = vmatprep.mubr.msk.f32.mxu0 %vm3329_vm0, %v3328_v0 }
0x109d   :  { %2964 = vmatprep.subr.mxu0 %v3328_v0 }
0x109e   :  { %2965 = vmatpush3.msra.mxu0 %v3476_v35  ;;  %v251_v35 = vadd.f32 %v3817_v58, %v3539_v50 }
0x109f   :  { %2966 = vmatprep.subr.mxu0 %v3328_v0 }
0x10a0   :  { %2967 = vmatpush3.msra.mxu0 %v3488_v39 }
0x10a1   :  { %2982 = vmatprep.subr.mxu0 %v3328_v0 }
0x1150   :  { %v1793_v25 = vpop.f32.mrf.mxu0 }
0x1151   :  { %v1868_v27 = vpop.f32.mrf.mxu1 }
0x1152   :  { %v1869_v29 = vadd.f32 %v1868_v27, %v1793_v25  ;;  %v2926_v32 = vpop.f32.mrf.mxu0 }
0x1153   :  { %v2937_v34 = vpop.f32.mrf.mxu1 }
0x1154   :  { %v1872_v30 = vadd.f32 %v3546_v52, %v1869_v29 }
0x1156   :  { %3116 = vtanh.f32 %v1872_v30  ;;  %v2579_v46 = vmul.f32 -1.442695, %v1872_v30 }
0x1158   :  { %v1963_v59 = vpop.f32.mrf.mxu0 }
0x1159   :  { %v1967_v39 = vadd.f32 %v1963_v59, %v251_v35 }
0x115a   :  { %v2948_v60 = vpop.f32.mrf.mxu0 }
0x115b   :  { %3118 = vtanh.f32 %v1967_v39  ;;  %v2581_v63 = vmul.f32 -1.442695, %v1967_v39 }
0x115c   :  { %3120 = vpow2.f32 %v2579_v46 }
0x115d   :  { %3122 = vpow2.f32 %v2581_v63 }
0x1163   :  { %v3117_v61 = vpop.eup %3116 }
0x1164   :  { %1882 = vrot.lane.b32.xlu0 %v3117_v61, %s3330_s16 }
0x1168   :  { %v3119_v62 = vpop.eup %3118 }
0x1169   :  { %1977 = vrot.lane.b32.xlu1 %v3119_v62, %s3330_s16  ;;  %v3121_v1 = vpop.eup %3120 }
0x116a   :  { %v1876_v3 = vadd.f32 1.0, %v3121_v1  ;;  %v3123_v4 = vpop.eup %3122 }
0x116b   :  { %v1971_v2 = vadd.f32 1.0, %v3123_v4 }
0x116c   :  { %3124 = vrcp.f32 %v1876_v3 }
0x116d   :  { %3126 = vrcp.f32 %v1971_v2 }
0x1179   :  { %v3125_v50 = vpop.eup %3124 }
0x117a   :  { %v3127_v7 = vpop.eup %3126  ;;  %v1880_v11 = vmul.f32 %v3125_v50, %v3762_v38 }
0x117b   :  { %v1975_v14 = vmul.f32 %v3127_v7, %v3764_v40 }
0x11d6   :  { %v1883_v5 = vpop.permute.xlu0 %1882 }
0x11d7   :  { %v1885_v6 = vmul.f32 %v3125_v50, %v1883_v5 }
0x11d9   :  { %1887 = vrot.lane.b32.xlu0 %v1885_v6, %s3331_s17 }
0x11db   :  { %v1978_v8 = vpop.permute.xlu1 %1977 }
0x11dc   :  { %v1980_v10 = vmul.f32 %v3127_v7, %v1978_v8 }
0x11de   :  { %1982 = vrot.lane.b32.xlu1 %v1980_v10, %s3331_s17 }
0x124b   :  { %v1888_v12 = vpop.permute.xlu0 %1887 }
0x124c   :  { %v3826_v13 = vadd.f32 %v1888_v12, %v1880_v11 }
0x124e   :  { %3128 = vtanh.f32 %v3826_v13 }
0x1250   :  { %v1983_v15 = vpop.permute.xlu1 %1982 }
0x1251   :  { %v3830_v16 = vadd.f32 %v1983_v15, %v1975_v14 }
0x1253   :  { %3130 = vtanh.f32 %v3830_v16 }
0x125b   :  { %v3129_v17 = vpop.eup %3128 }
0x125c   :  { %1893 = vrot.lane.b32.xlu0 %v3129_v17, %s3330_s16 }
0x1260   :  { %v3131_v19 = vpop.eup %3130 }
0x1261   :  { %1988 = vrot.lane.b32.xlu1 %v3131_v19, %s3330_s16 }
0x12ce   :  { %v1894_v20 = vpop.permute.xlu0 %1893 }
0x12cf   :  { %v1896_v9 = vmul.f32 %v3125_v50, %v1894_v20 }
0x12d1   :  { %1993 = vrot.lane.b32.xlu0 %v1896_v9, %s3331_s17 }
0x12d3   :  { %v1989_v47 = vpop.permute.xlu1 %1988 }
0x12d4   :  { %v1991_v21 = vmul.f32 %v3127_v7, %v1989_v47 }
0x12d6   :  { %2068 = vrot.lane.b32.xlu1 %v1991_v21, %s3331_s17 }
0x1343   :  { %v1994_v22 = vpop.permute.xlu0 %1993 }
0x1344   :  { %2958 = vmatmul.mubr.msk.f32.vlgmr.msra.gmra.mxu1 %vm272_vm2, %v1994_v22 }
0x1345   :  { %2972 = vmatpush3.msra.mxu1 %v3774_v54  ;;  %2979 = vmatprep.mubr.msk.f32.mxu1 %vm3329_vm0, %v3328_v0 }
0x1346   :  { %2973 = vmatprep.subr.mxu1 %v3328_v0 }
0x1347   :  { %2974 = vmatpush3.msra.mxu1 %v3780_v55 }
0x1348   :  { %2975 = vmatprep.subr.mxu1 %v3328_v0  ;;  %v2069_v18 = vpop.permute.xlu1 %2068 }
0x1349   :  { %2976 = vmatpush3.msra.mxu1 %v3786_v56  ;;  %2969 = vmatmul.mubr.msk.f32.vlgmr.msra.gmra.mxu0 %vm272_vm2, %v2069_v18 }
0x134a   :  { %2977 = vmatprep.subr.mxu1 %v3328_v0  ;;  %2983 = vmatpush3.msra.mxu0 %v3161_v23  ;;  %v2440_v23 = vld [vmem:[#allocation11 + $0x18] sm:$0xff] }
0x134b   :  { %2978 = vmatpush3.msra.mxu1 %v3792_v57  ;;  %2984 = vmatprep.subr.mxu0 %v3328_v0 }
0x134c   :  { %2980 = vmatmul.mubr.msk.f32.vlgmr.msra.gmra.mxu1 %vm272_vm2, %v2069_v18  ;;  %2993 = vmatprep.subr.mxu1 %v3328_v0 }
0x134d   :  { %2994 = vmatpush3.msra.mxu1 %v3162_v26  ;;  %2985 = vmatpush3.msra.mxu0 %v3163_v28  ;;  %v2439_v26 = vld [vmem:[#allocation11 + $0x10] sm:$0xff]  ;;  %v2438_v28 = vld [vmem:[#allocation11 + $0x8] sm:$0xff] }
0x134e   :  { %2995 = vmatprep.subr.mxu1 %v3328_v0  ;;  %2986 = vmatprep.subr.mxu0 %v3328_v0 }
0x134f   :  { %2996 = vmatpush3.msra.mxu1 %v3164_v24  ;;  %2987 = vmatpush3.msra.mxu0 %v3165_v31  ;;  %v2437_v24 = vld [vmem:[#allocation11] sm:$0xff] }
0x1350   :  { %2997 = vmatprep.subr.mxu1 %v3328_v0  ;;  %2988 = vmatprep.subr.mxu0 %v3328_v0 }
0x1351   :  { %2998 = vmatpush3.msra.mxu1 %v3166_v33  ;;  %3001 = vmatprep.mubr.msk.f32.mxu1 %vm3329_vm0, %v3328_v0 }
0x1352   :  { %2999 = vmatprep.subr.mxu1 %v3328_v0  ;;  %2989 = vmatpush3.msra.mxu0 %v3167_v36 }
0x1353   :  { %3000 = vmatpush3.msra.mxu1 %v3168_v37  ;;  %2990 = vmatprep.mubr.msk.f32.mxu0 %vm3329_vm0, %v3328_v0 }
0x1354   :  { %3004 = vmatprep.subr.mxu0 %v3328_v0 }
0x1404   :  { %v2063_v38 = vpop.f32.mrf.mxu1 }
0x1406   :  { %v2959_v40 = vpop.f32.mrf.mxu1 }
0x1409   :  { %v2138_v41 = vpop.f32.mrf.mxu0 }
0x140a   :  { %v2139_v42 = vadd.f32 %v2138_v41, %v2063_v38  ;;  %v2590_v38 = vld [vmem:[%s3903_s8] ss:$0 sm:$0xff] }
0x140b   :  { %v2970_v43 = vpop.f32.mrf.mxu0 }
0x140c   :  { %v2142_v44 = vadd.f32 %v3546_v52, %v2139_v42  ;;  %v2233_v51 = vpop.f32.mrf.mxu1 }
0x140d   :  { %v2237_v45 = vadd.f32 %v2233_v51, %v256_v48 }
0x140e   :  { %3132 = vtanh.f32 %v2142_v44  ;;  %v2981_v53 = vpop.f32.mrf.mxu1  ;;  %v2584_v56 = vmul.f32 -1.442695, %v2142_v44 }
0x140f   :  { %3134 = vtanh.f32 %v2237_v45  ;;  %v2586_v57 = vmul.f32 -1.442695, %v2237_v45 }
0x1410   :  { %3136 = vpow2.f32 %v2584_v56 }
0x1411   :  { %3138 = vpow2.f32 %v2586_v57 }
0x141b   :  { %v3133_v54 = vpop.eup %3132 }
0x141c   :  { %v3135_v55 = vpop.eup %3134  ;;  %2152 = vrot.lane.b32.xlu0 %v3133_v54, %s3330_s16 }
0x141d   :  { %2247 = vrot.lane.b32.xlu1 %v3135_v55, %s3330_s16  ;;  %v3137_v25 = vpop.eup %3136 }
0x141e   :  { %v3139_v49 = vpop.eup %3138  ;;  %v2146_v27 = vadd.f32 1.0, %v3137_v25 }
0x141f   :  { %v2241_v29 = vadd.f32 1.0, %v3139_v49 }
0x1420   :  { %3140 = vrcp.f32 %v2146_v27 }
0x1421   :  { %3142 = vrcp.f32 %v2241_v29 }
0x142d   :  { %v3141_v52 = vpop.eup %3140 }
0x142e   :  { %v3143_v34 = vpop.eup %3142  ;;  %v2150_v59 = vmul.f32 %v3141_v52, %v3826_v13  ;;  %v3169_v13 = vld [vmem:[%s3901_s6] ss:$0 sm:$0xff] }
0x142f   :  { %v2245_v39 = vmul.f32 %v3143_v34, %v3830_v16 }
0x148e   :  { %v2153_v32 = vpop.permute.xlu0 %2152 }
0x148f   :  { %v2248_v30 = vpop.permute.xlu1 %2247  ;;  %v2155_v58 = vmul.f32 %v3141_v52, %v2153_v32 }
0x1490   :  { %v2250_v35 = vmul.f32 %v3143_v34, %v2248_v30 }
0x1491   :  { %2157 = vrot.lane.b32.xlu0 %v2155_v58, %s3331_s17 }
0x1492   :  { %2252 = vrot.lane.b32.xlu1 %v2250_v35, %s3331_s17 }
0x1503   :  { %v2158_v60 = vpop.permute.xlu0 %2157 }
0x1504   :  { %v2253_v61 = vpop.permute.xlu1 %2252  ;;  %v2160_v62 = vadd.f32 %v2158_v60, %v2150_v59 }
0x1505   :  { %v2255_v46 = vadd.f32 %v2253_v61, %v2245_v39 }
0x1506   :  { %3144 = vtanh.f32 %v2160_v62 }
0x1507   :  { %3146 = vtanh.f32 %v2255_v46 }
0x1513   :  { %v3145_v63 = vpop.eup %3144 }
0x1514   :  { %v3147_v1 = vpop.eup %3146  ;;  %2163 = vrot.lane.b32.xlu0 %v3145_v63, %s3330_s16 }
0x1515   :  { %2258 = vrot.lane.b32.xlu1 %v3147_v1, %s3330_s16 }
0x1586   :  { %v2164_v3 = vpop.permute.xlu0 %2163 }
0x1587   :  { %v2259_v4 = vpop.permute.xlu1 %2258  ;;  %v2166_v2 = vmul.f32 %v3141_v52, %v2164_v3 }
0x1588   :  { %v2261_v50 = vmul.f32 %v3143_v34, %v2259_v4 }
0x1589   :  { %2263 = vrot.lane.b32.xlu0 %v2166_v2, %s3331_s17 }
0x158a   :  { %2338 = vrot.lane.b32.xlu1 %v2261_v50, %s3331_s17 }
0x15fb   :  { %v2264_v5 = vpop.permute.xlu0 %2263 }
0x15fc   :  { %v2339_v6 = vpop.permute.xlu1 %2338  ;;  %2991 = vmatmul.mubr.msk.f32.vlgmr.msra.gmra.mxu0 %vm272_vm2, %v2264_v5 }
0x15fd   :  { %3002 = vmatmul.mubr.msk.f32.vlgmr.msra.gmra.mxu1 %vm272_vm2, %v2339_v6  ;;  %3012 = vmatprep.mubr.msk.f32.mxu0 %vm3329_vm0, %v3328_v0 }
0x15fe   :  { %3005 = vmatpush3.msra.mxu0 %v2440_v23 }
0x15ff   :  { %3006 = vmatprep.subr.mxu0 %v3328_v0 }
0x1600   :  { %3007 = vmatpush3.msra.mxu0 %v2439_v26 }
0x1601   :  { %3008 = vmatprep.subr.mxu0 %v3328_v0 }
0x1602   :  { %3009 = vmatpush3.msra.mxu0 %v2438_v28 }
0x1603   :  { %3010 = vmatprep.subr.mxu0 %v3328_v0 }
0x1604   :  { %3011 = vmatpush3.msra.mxu0 %v2437_v24 }
0x16bc   :  { %v2333_v7 = vpop.f32.mrf.mxu0 }
0x16bd   :  { %v2408_v8 = vpop.f32.mrf.mxu1 }
0x16be   :  { %v2409_v10 = vadd.f32 %v2408_v8, %v2333_v7  ;;  %v2992_v11 = vpop.f32.mrf.mxu0 }
0x16bf   :  { %v3003_v12 = vpop.f32.mrf.mxu1 }
0x16c0   :  { %v2412_v14 = vadd.f32 %v3169_v13, %v2409_v10 }
0x16c2   :  { %3148 = vtanh.f32 %v2412_v14  ;;  %v2589_v16 = vmul.f32 -1.442695, %v2412_v14 }
0x16c4   :  { %3150 = vpow2.f32 %v2589_v16 }
0x16cf   :  { %v3149_v15 = vpop.eup %3148 }
0x16d0   :  { %2422 = vrot.lane.b32.xlu0 %v3149_v15, %s3330_s16 }
0x16d1   :  { %v3151_v17 = vpop.eup %3150 }
0x16d2   :  { %v2416_v19 = vadd.f32 1.0, %v3151_v17 }
0x16d4   :  { %3152 = vrcp.f32 %v2416_v19 }
0x16e1   :  { %v3153_v20 = vpop.eup %3152 }
0x16e2   :  { %v2420_v21 = vmul.f32 %v3153_v20, %v2160_v62 }
0x1742   :  { %v2423_v9 = vpop.permute.xlu0 %2422 }
0x1743   :  { %v2425_v47 = vmul.f32 %v3153_v20, %v2423_v9 }
0x1745   :  { %2427 = vrot.lane.b32.xlu1 %v2425_v47, %s3331_s17 }
0x17b7   :  { %v2428_v22 = vpop.permute.xlu1 %2427 }
0x17b8   :  { %v2430_v18 = vadd.f32 %v2428_v22, %v2420_v21 }
0x17ba   :  { %3154 = vtanh.f32 %v2430_v18 }
0x17c7   :  { %v3155_v31 = vpop.eup %3154 }
0x17c8   :  { %2433 = vrot.lane.b32.xlu0 %v3155_v31, %s3330_s16 }
0x183a   :  { %v2434_v33 = vpop.permute.xlu0 %2433 }
0x183b   :  { %v2436_v36 = vmul.f32 %v3153_v20, %v2434_v33 }
0x183d   :  { %2449 = vrot.lane.b32.xlu1 %v2436_v36, %s3331_s17 }
0x18af   :  { %v2450_v37 = vpop.permute.xlu1 %2449 }
0x18b0   :  { %3013 = vmatmul.mubr.msk.f32.vlgmr.msra.gmra.mxu0 %vm272_vm2, %v2450_v37 }
0x1970   :  { %v2519_v40 = vpop.f32.mrf.mxu0 }
0x1971   :  { %v2520_v41 = vadd.f32 %v2590_v38, %v2519_v40 }
0x1972   :  { %v3014_v0 = vpop.f32.mrf.mxu0 }
0x1973   :  { %2523 = vst [vmem:[#allocation13] sm:$0xff] %v2520_v41 }
0x1974   :  { %3301 = shalt.err (!%p3298_p6)
}
0x1975   :  { %2533 = dma.vmem_to_hbm [thread:$0]  %s2531_s24, 128, %s3904_s9, [#allocation4]  }
0x1976   :  { %3318 = dma.done.wait [#allocation4], 128  }
0x1977   :  { %3319 = vsyncadd [#allocation4], 4294967168 }
0x1978   :  { %2537 = vsyncpa [#allocation3], 1 }
0x1979   :  { %2538 = vsyncpa [#allocation6], 1 }
0x197a   :  { %2539 = vsyncpa [#allocation9], 1 }
0x197b   :  { %2540 = vsyncpa [#allocation12], 1 }
0x197c   :  { %2541 = vsyncpa [#allocation4], 1 }

</bundles_post_ra>
